<compile_context>
chip_gen: v5e
topology: v5e:2x2
jax: 0.10.0
libtpu: 0.0.40
codegen_flags: <defaults>
</compile_context>

<pallas_src>
import jax
import jax.numpy as jnp
from jax import lax
from jax.experimental import pallas as pl
from jax.experimental.pallas import tpu as pltpu


def _embedding_kernel(idx_ref, w_ref, o_ref):
    """idx_ref: VMEM (tile, 1) int32 token ids for this grid step
       w_ref:   VMEM (V, D)    embedding table (resident across the grid)
       o_ref:   VMEM (tile, D) output block
    """
    tile = o_ref.shape[0]
    vocab = w_ref.shape[0]

    ids = idx_ref[...]                                        # (tile, 1) int32
    iota = lax.broadcasted_iota(jnp.int32, (tile, vocab), 1)  # (tile, V)
    onehot = (iota == ids).astype(w_ref.dtype)                # exact 0/1 rows

    # One-hot gather on the MXU. HIGHEST precision keeps the f32 row copy
    # exact (1.0 * w reconstructs w to full f32 precision).
    o_ref[...] = jnp.dot(
        onehot,
        w_ref[...],
        preferred_element_type=jnp.float32,
        precision=jax.lax.Precision.HIGHEST,
    ).astype(o_ref.dtype)


def embedding_lookup(indices, weight, *, tile=256):
    """Pallas equivalent of nn.Embedding(V, D)(indices)."""
    orig_shape = indices.shape
    flat = indices.reshape(-1).astype(jnp.int32)
    T = int(flat.shape[0])
    V, D = weight.shape
    itemsize = jnp.dtype(weight.dtype).itemsize

    # Sub-32-bit dtypes pack along sublanes: keep the token tile a multiple of
    # the packed sublane count so the (tile, D) output stores stay unmasked.
    sublane_mult = {4: 8, 2: 16, 1: 32}.get(itemsize, 8)
    tile = max(sublane_mult, (tile // sublane_mult) * sublane_mult)

    n_tiles = -(-T // tile)
    T_pad = n_tiles * tile
    if T_pad != T:
        # Padding tokens gather row 0; they are sliced off below.
        flat = jnp.pad(flat, (0, T_pad - T))
    idx2d = flat.reshape(T_pad, 1)

    # ---- VMEM budget: resident table + double-buffered idx / output blocks.
    table_bytes = V * D * itemsize
    out_block_bytes = tile * D * itemsize
    idx_block_bytes = tile * 4
    vmem_needed = 2 * table_bytes + 2 * (out_block_bytes + idx_block_bytes) + (2 << 20)
    vmem_limit = int(min(max(vmem_needed, 32 * 1024 * 1024), 100 * 1024 * 1024))
    # TODO(synk): for tables larger than ~48 MiB (v7x has 64 MiB physical VMEM),
    # keep the weight in HBM (memory_space=pl.ANY) and DMA-gather row groups
    # instead of holding the whole table resident in VMEM.

    cost = pl.CostEstimate(
        flops=2 * T_pad * V * D,  # one-hot MXU matmul
        transcendentals=0,
        bytes_accessed=int(table_bytes + T_pad * D * itemsize + T_pad * 4),
    )

    out = pl.pallas_call(
        _embedding_kernel,
        out_shape=jax.ShapeDtypeStruct((T_pad, D), weight.dtype),
        grid_spec=pltpu.PrefetchScalarGridSpec(
            num_scalar_prefetch=0,
            grid=(n_tiles,),
            in_specs=[
                # Per-tile token ids, auto-pipelined (no whole-array SMEM prefetch).
                pl.BlockSpec((tile, 1), lambda i: (i, 0)),
                # Whole embedding table resident in VMEM across all steps.
                pl.BlockSpec((V, D), lambda i: (0, 0)),
            ],
            out_specs=pl.BlockSpec((tile, D), lambda i: (i, 0)),
        ),
        compiler_params=pltpu.CompilerParams(
            dimension_semantics=("parallel",),
            vmem_limit_bytes=vmem_limit,
        ),
        cost_estimate=cost,
    )(idx2d, weight)

    out = out[:T]
    return out.reshape(*orig_shape, D)


if __name__ == "__main__":
    # Small shapes consistent with the module: vocab (dim_matrix) = 32,
    # embed_dim = 128, indices of shape (batch=2, seq=8).
    vocab, embed_dim = 32, 128
    batch, seq = 2, 8

    key = jax.random.PRNGKey(0)
    k_w, k_x = jax.random.split(key)

    # nn.Embedding initializes weights ~ N(0, 1).
    weight = jax.random.normal(k_w, (vocab, embed_dim), dtype=jnp.float32)
    x = jax.random.randint(k_x, (batch, seq), 0, vocab, dtype=jnp.int32)

    out = embedding_lookup(x, weight)
    out = jax.block_until_ready(out)

    # Reference check against plain JAX gather (== torch embedding lookup).
    ref = weight[x]
    assert out.shape == (batch, seq, embed_dim)
    assert jnp.allclose(out, ref, rtol=1e-5, atol=1e-6), "Pallas embedding mismatch"

    print("KERNEL_OK")
</pallas_src>

<mosaic_0001>
module attributes {stable_mosaic.version = 11 : i64} {
  func.func @_embedding_kernel(%arg0: i32, %arg1: memref<256x1xi32, #tpu.memory_space<vmem>>, %arg2: memref<32x128xf32, #tpu.memory_space<vmem>>, %arg3: memref<256x128xf32, #tpu.memory_space<vmem>>) attributes {dimension_semantics = [#tpu.dimension_semantics<parallel>], iteration_bounds = array<i64: 1>, scalar_prefetch = 0 : i64, scratch_operands = 0 : i64, tpu.core_type = #tpu.core_type<tc>, window_params = [{transform_indices = @transform_0, window_bounds = array<i64: 256, 1>}, {pipeline_mode = #tpu.pipeline_mode<synchronous>, transform_indices = @transform_1, window_bounds = array<i64: 32, 128>}, {transform_indices = @transform_2, window_bounds = array<i64: 256, 128>}]} {
    %c0 = arith.constant 0 : index
    %c0_0 = arith.constant 0 : index
    %0 = vector.load %arg1[%c0, %c0_0] : memref<256x1xi32, #tpu.memory_space<vmem>>, vector<256x1xi32>
    %1 = tpu.iota {dimensions = array<i32: 1>} : vector<256x32xi32>
    %2 = vector.broadcast %0 : vector<256x1xi32> to vector<256x32xi32>
    %3 = arith.cmpi eq, %1, %2 : vector<256x32xi32>
    %4 = arith.extui %3 : vector<256x32xi1> to vector<256x32xi32>
    %5 = arith.sitofp %4 : vector<256x32xi32> to vector<256x32xf32>
    %c0_1 = arith.constant 0 : index
    %c0_2 = arith.constant 0 : index
    %6 = vector.load %arg2[%c0_1, %c0_2] : memref<32x128xf32, #tpu.memory_space<vmem>>, vector<32x128xf32>
    %cst = arith.constant dense<0.000000e+00> : vector<256x128xf32>
    %7 = tpu.matmul %5, %6, %cst {dimension_numbers = #tpu.dot_dimension_numbers<[1], [0], [0], [1], [0, 0, 1, 1], [], []>, precision = #tpu.contract_precision<fp32>} : vector<256x32xf32>, vector<32x128xf32>, vector<256x128xf32> -> vector<256x128xf32>
    %c0_3 = arith.constant 0 : index
    %c0_4 = arith.constant 0 : index
    %8 = vector.load %arg3[%c0_3, %c0_4] : memref<256x128xf32, #tpu.memory_space<vmem>>, vector<256x128xf32>
    tpu.vector_store %arg3[%c0_3, %c0_4], %7 {strides = array<i32>} : memref<256x128xf32, #tpu.memory_space<vmem>>, vector<256x128xf32>,
    return
  }
  func.func @transform_0(%arg0: i32) -> (i32, i32) {
    %c0_i32 = arith.constant 0 : i32
    %c0_i32_0 = arith.constant 0 : i32
    return %arg0, %c0_i32 : i32, i32
  }
  func.func @transform_1(%arg0: i32) -> (i32, i32) {
    %c0_i32 = arith.constant 0 : i32
    %c0_i32_0 = arith.constant 0 : i32
    %c0_i32_1 = arith.constant 0 : i32
    return %c0_i32, %c0_i32_0 : i32, i32
  }
  func.func @transform_2(%arg0: i32) -> (i32, i32) {
    %c0_i32 = arith.constant 0 : i32
    %c0_i32_0 = arith.constant 0 : i32
    return %arg0, %c0_i32 : i32, i32
  }
}

</mosaic_0001>

<bundles_post_ra>
// kernel: tpu_custom_call.1
= control target key start
LH: loop header
LB: loop body
LE: loop exit
PB: predicated region body
PF: predicated region fallthrough
CT: control target
= control target key end

     0   :  { %v1705_v3 = vmov 0   ;;  %s2654_s0 = inlined_call_operand.vmem [shape: s32[256,1], index: 0, kind: input, shape index: {}]   ;;  %s2655_s1 = inlined_call_operand.vmem [shape: f32[32,128], index: 1, kind: input, shape index: {}]   ;;  %s2656_s2 = inlined_call_operand.hbm [shape: f32[256,128], index: 2, kind: output, shape index: {}]  }
   0x1   :  { %v28_v0 = vld [vmem:[%s2654_s0 + $0x80] sm:$0xff]  ;;  %v13_v1 = vld [vmem:[%s2654_s0 + $0x8] sm:$0xff]  ;;  %1678 = vset.pattern.permute.xlu2 %v1705_v3  ;;  %1677 = vset.pattern.permute.xlu1 %v1705_v3 }
   0x2   :  { %v12_v2 = vld [vmem:[%s2654_s0] sm:$0xff]  ;;  %1676 = vset.pattern.permute.xlu0 %v1705_v3  ;;  %50 = vperm.xlu2 %1678, %v13_v1  }
   0x3   :  { %95 = vperm.xlu0 %1676, %v28_v0   ;;  %47 = vperm.xlu1 %1677, %v12_v2  }
   0x4   :  { %7 = vsyncpa [#allocation3], 0  ;;  %v31_v4 = vld [vmem:[%s2654_s0 + $0x98] sm:$0xff]  ;;  %v29_v5 = vld [vmem:[%s2654_s0 + $0x88] sm:$0xff]  ;;  %v44_v57 = vlaneseq  ;;  %v2679_v60 = vmov 0.0   ;;  %vm242_vm1 = vcmask 261120  }
   0x5   :  { %v30_v6 = vld [vmem:[%s2654_s0 + $0x90] sm:$0xff]  ;;  %v15_v7 = vld [vmem:[%s2654_s0 + $0x18] sm:$0xff]  ;;  %v32_v9 = vld [vmem:[%s2654_s0 + $0xa0] sm:$0xff]  ;;  %s1523_s27 = sshll.u32 %s2656_s2, 4  ;;  %s1708_s28 = smov 128   ;;  %s1524_s27 = int_to_ptr.hbm [resolvable:$true] %s1523_s27 }
   0x6   :  { %v14_v8 = vld [vmem:[%s2654_s0 + $0x10] sm:$0xff]  ;;  %v33_v11 = vld [vmem:[%s2654_s0 + $0xa8] sm:$0xff]  ;;  %v16_v12 = vld [vmem:[%s2654_s0 + $0x20] sm:$0xff]  ;;  %v1833_v59 = vand.u32 127, %v44_v57  ;;  %s1709_s29 = smov 8  }
   0x7   :  { %v34_v10 = vld [vmem:[%s2654_s0 + $0xb0] sm:$0xff]  ;;  %v17_v14 = vld [vmem:[%s2654_s0 + $0x28] sm:$0xff]  ;;  %v35_v15 = vld [vmem:[%s2654_s0 + $0xb8] sm:$0xff] }
   0x8   :  { %v18_v13 = vld [vmem:[%s2654_s0 + $0x30] sm:$0xff]  ;;  %v37_v16 = vld [vmem:[%s2654_s0 + $0xc8] sm:$0xff]  ;;  %v36_v17 = vld [vmem:[%s2654_s0 + $0xc0] sm:$0xff] }
   0x9   :  { %v19_v18 = vld [vmem:[%s2654_s0 + $0x38] sm:$0xff]  ;;  %v21_v19 = vld [vmem:[%s2654_s0 + $0x48] sm:$0xff]  ;;  %v20_v20 = vld [vmem:[%s2654_s0 + $0x40] sm:$0xff] }
   0xa   :  { %104 = vperm.xlu2 %1678, %v31_v4   ;;  %v38_v21 = vld [vmem:[%s2654_s0 + $0xd0] sm:$0xff]  ;;  %v40_v22 = vld [vmem:[%s2654_s0 + $0xe0] sm:$0xff]  ;;  %v39_v23 = vld [vmem:[%s2654_s0 + $0xd8] sm:$0xff] }
   0xb   :  { %98 = vperm.xlu0 %1676, %v29_v5   ;;  %101 = vperm.xlu1 %1677, %v30_v6   ;;  %v22_v24 = vld [vmem:[%s2654_s0 + $0x50] sm:$0xff]  ;;  %v24_v25 = vld [vmem:[%s2654_s0 + $0x60] sm:$0xff]  ;;  %v23_v26 = vld [vmem:[%s2654_s0 + $0x58] sm:$0xff] }
   0xc   :  { %v41_v27 = vld [vmem:[%s2654_s0 + $0xe8] sm:$0xff]  ;;  %v241_v28 = vld [vmem:[%s2655_s1 + $0x18] sm:$0xff]  ;;  %v42_v31 = vld [vmem:[%s2654_s0 + $0xf0] sm:$0xff] }
   0xd   :  { %v43_v29 = vld [vmem:[%s2654_s0 + $0xf8] sm:$0xff]  ;;  %v351_v30 = vand.u32 4294901760, %v241_v28  ;;  %v25_v32 = vld [vmem:[%s2654_s0 + $0x68] sm:$0xff]  ;;  %v240_v33 = vld [vmem:[%s2655_s1 + $0x10] sm:$0xff] }
   0xe   :  { %v353_v35 = vand.u32 4294901760, %v240_v33  ;;  %v239_v36 = vld [vmem:[%s2655_s1 + $0x8] sm:$0xff]  ;;  %v238_v40 = vld [vmem:[%s2655_s1] sm:$0xff]  ;;  %v26_v49 = vld [vmem:[%s2654_s0 + $0x70] sm:$0xff] }
   0xf   :  { %v629_v34 = vsub.f32 %v241_v28, %v351_v30  ;;  %352 = vmatpush.msra.mxu0 %v351_v30  ;;  %1663 = vmatpush.msra.mxu2 %v351_v30  ;;  %v355_v39 = vand.u32 4294901760, %v239_v36  ;;  %v357_v44 = vand.u32 4294901760, %v238_v40  ;;  %v27_v50 = vld [vmem:[%s2654_s0 + $0x78] sm:$0xff]  ;;  %s1707_s0 = smov [#allocation2]  }
  0x10   :  { %v635_v38 = vsub.f32 %v240_v33, %v353_v35  ;;  %s1521_s1 = sshll.u32 %s1707_s0, 4  ;;  %s1522_s1 = int_to_ptr.vmem [resolvable:$true] %s1521_s1 }
  0x11   :  { %v630_v37 = vand.u32 4294901760, %v629_v34  ;;  %354 = vmatpush.msra.mxu0 %v353_v35  ;;  %1664 = vmatpush.msra.mxu2 %v353_v35  ;;  %v641_v43 = vsub.f32 %v239_v36, %v355_v39  ;;  %v647_v48 = vsub.f32 %v238_v40, %v357_v44 }
  0x12   :  { %56 = vperm.xlu2 %1678, %v15_v7   ;;  %v636_v42 = vand.u32 4294901760, %v635_v38 }
  0x13   :  { %53 = vperm.xlu0 %1676, %v14_v8   ;;  %107 = vperm.xlu1 %1677, %v32_v9   ;;  %v631_v41 = vsub.f32 %v629_v34, %v630_v37  ;;  %v642_v47 = vand.u32 4294901760, %v641_v43  ;;  %v648_v53 = vand.u32 4294901760, %v647_v48 }
  0x14   :  { %356 = vmatpush.msra.mxu0 %v355_v39  ;;  %1665 = vmatpush.msra.mxu2 %v355_v39  ;;  %v637_v46 = vsub.f32 %v635_v38, %v636_v42 }
  0x15   :  { %v632_v45 = vand.u32 4294901760, %v631_v41  ;;  %v643_v52 = vsub.f32 %v641_v43, %v642_v47  ;;  %v649_v55 = vsub.f32 %v647_v48, %v648_v53 }
  0x16   :  { %358 = vmatpush.msra.mxu0 %v357_v44  ;;  %1666 = vmatpush.msra.mxu2 %v357_v44  ;;  %v638_v51 = vand.u32 4294901760, %v637_v46 }
  0x17   :  { %633 = vmatpush.msra.mxu1 %v632_v45  ;;  %1667 = vmatpush.msra.mxu3 %v632_v45  ;;  %v644_v54 = vand.u32 4294901760, %v643_v52  ;;  %v650_v56 = vand.u32 4294901760, %v649_v55 }
  0x18   :  { %795 = vmatpush.msrb.mxu2 %v629_v34  ;;  %1194 = vmatpush.msrb.mxu0 %v630_v37 }
  0x19   :  { %639 = vmatpush.msra.mxu1 %v638_v51  ;;  %1668 = vmatpush.msra.mxu3 %v638_v51 }
  0x1a   :  { %113 = vperm.xlu2 %1678, %v34_v10   ;;  %798 = vmatpush.msrb.mxu2 %v635_v38 }
  0x1b   :  { %110 = vperm.xlu0 %1676, %v33_v11   ;;  %59 = vperm.xlu1 %1677, %v16_v12  }
  0x1c   :  { %1198 = vmatpush.msrb.mxu0 %v636_v42  ;;  %645 = vmatpush.msra.mxu1 %v644_v54 }
  0x1d   :  { %1669 = vmatpush.msra.mxu3 %v644_v54  ;;  %801 = vmatpush.msrb.mxu2 %v641_v43 }
  0x1e   :  { %1202 = vmatpush.msrb.mxu0 %v642_v47  ;;  %651 = vmatpush.msra.mxu1 %v650_v56 }
  0x1f   :  { %1670 = vmatpush.msra.mxu3 %v650_v56  ;;  %804 = vmatpush.msrb.mxu2 %v647_v48 }
  0x20   :  { %1349 = vmatpush.msrb.mxu1 %v351_v30  ;;  %1206 = vmatpush.msrb.mxu0 %v648_v53 }
  0x21   :  { %979 = vmatpush.msrb.mxu3 %v351_v30 }
  0x22   :  { %65 = vperm.xlu2 %1678, %v18_v13   ;;  %1351 = vmatpush.msrb.mxu1 %v353_v35 }
  0x23   :  { %62 = vperm.xlu0 %1676, %v17_v14   ;;  %116 = vperm.xlu1 %1677, %v35_v15  }
  0x24   :  { %981 = vmatpush.msrb.mxu3 %v353_v35  ;;  %1353 = vmatpush.msrb.mxu1 %v355_v39 }
  0x26   :  { %983 = vmatpush.msrb.mxu3 %v355_v39  ;;  %1355 = vmatpush.msrb.mxu1 %v357_v44 }
  0x28   :  { %985 = vmatpush.msrb.mxu3 %v357_v44 }
  0x2a   :  { %122 = vperm.xlu2 %1678, %v37_v16  }
  0x2b   :  { %119 = vperm.xlu0 %1676, %v36_v17   ;;  %68 = vperm.xlu1 %1677, %v19_v18  }
  0x32   :  { %74 = vperm.xlu2 %1678, %v21_v19  }
  0x33   :  { %71 = vperm.xlu0 %1676, %v20_v20   ;;  %125 = vperm.xlu1 %1677, %v38_v21  }
  0x3a   :  { %131 = vperm.xlu2 %1678, %v40_v22  }
  0x3b   :  { %128 = vperm.xlu0 %1676, %v39_v23   ;;  %77 = vperm.xlu1 %1677, %v22_v24  }
  0x42   :  { %83 = vperm.xlu2 %1678, %v24_v25  }
  0x43   :  { %80 = vperm.xlu0 %1676, %v23_v26   ;;  %134 = vperm.xlu1 %1677, %v41_v27  }
  0x4a   :  { %140 = vperm.xlu2 %1678, %v43_v29  }
  0x4b   :  { %137 = vperm.xlu0 %1676, %v42_v31   ;;  %86 = vperm.xlu1 %1677, %v25_v32  }
  0x53   :  { %89 = vperm.xlu0 %1676, %v26_v49   ;;  %92 = vperm.xlu1 %1677, %v27_v50  }
  0x5c   :  { %v51_v58 = vpop.permute.xlu2 %50 }
  0x5d   :  { %vm143_vm0 = vcmp.eq.s32.totalorder %v1833_v59, %v51_v58 }
  0x5e   :  { %v1837_v61 = vsel %vm143_vm0, 1.0, %v2679_v60 }
  0x5f   :  { %v247_v0 = vsel %vm242_vm1, %v1837_v61, 0 }
  0x60   :  { %v1857_v6 = vsub.f32 %v247_v0, %v247_v0 }
  0x62   :  { %v2677_v15 = vand.u32 4294901760, %v1857_v6 }
  0x64   :  { %v105_v1 = vpop.permute.xlu2 %104  ;;  %v370_v24 = vsub.f32 %v1857_v6, %v2677_v15 }
  0x65   :  { %vm161_vm7 = vcmp.eq.s32.totalorder %v1833_v59, %v105_v1 }
  0x66   :  { %v371_v30 = vand.u32 4294901760, %v370_v24  ;;  %v1905_v32 = vsel %vm161_vm7, 1.0, %v2679_v60 }
  0x67   :  { %v301_v38 = vsel %vm242_vm1, %v1905_v32, 0 }
  0x68   :  { %v1928_v42 = vsub.f32 %v301_v38, %v301_v38 }
  0x6a   :  { %v2661_v54 = vand.u32 4294901760, %v1928_v42 }
  0x6c   :  { %v57_v21 = vpop.permute.xlu2 %56 }
  0x6d   :  { %vm145_vm6 = vcmp.eq.s32.totalorder %v1833_v59, %v57_v21 }
  0x6e   :  { %v1899_v27 = vsel %vm145_vm6, 1.0, %v2679_v60 }
  0x6f   :  { %v253_v35 = vsel %vm242_vm1, %v1899_v27, 0 }
  0x70   :  { %v1924_v40 = vsub.f32 %v253_v35, %v253_v35 }
  0x72   :  { %v2673_v51 = vand.u32 4294901760, %v1924_v40 }
  0x74   :  { %v114_v48 = vpop.permute.xlu2 %113  ;;  %v386_v57 = vsub.f32 %v1924_v40, %v2673_v51 }
  0x75   :  { %v96_v62 = vpop.permute.xlu0 %95  ;;  %v48_v63 = vpop.permute.xlu1 %47  ;;  %vm164_vm14 = vcmp.eq.s32.totalorder %v1833_v59, %v114_v48 }
  0x76   :  { %vm158_vm2 = vcmp.eq.s32.totalorder %v1833_v59, %v96_v62  ;;  %vm142_vm3 = vcmp.eq.s32.totalorder %v1833_v59, %v48_v63  ;;  %v514_v62 = vsub.f32 %v1928_v42, %v2661_v54 }
  0x77   :  { %v1844_v2 = vsel %vm158_vm2, 1.0, %v2679_v60  ;;  %v1847_v3 = vsel %vm142_vm3, 1.0, %v2679_v60 }
  0x78   :  { %v292_v4 = vsel %vm242_vm1, %v1844_v2, 0  ;;  %v244_v5 = vsel %vm242_vm1, %v1847_v3, 0  ;;  %1567 = vmatmul.msk.f32.vlgmr.msra.gmra.mxu1 %vm242_vm1, %v1847_v3  ;;  %1583 = vmatmul.msk.f32.vlgmr.msra.gmra.mxu3 %vm242_vm1, %v1844_v2 }
  0x79   :  { %v1859_v7 = vsub.f32 %v292_v4, %v292_v4  ;;  %v1861_v8 = vsub.f32 %v244_v5, %v244_v5  ;;  %v387_v5 = vand.u32 4294901760, %v386_v57 }
  0x7b   :  { %v2678_v9 = vand.u32 4294901760, %v1861_v8  ;;  %v2665_v10 = vand.u32 4294901760, %v1859_v7 }
  0x7d   :  { %v99_v11 = vpop.permute.xlu0 %98  ;;  %v102_v12 = vpop.permute.xlu1 %101  ;;  %v362_v13 = vsub.f32 %v1861_v8, %v2678_v9  ;;  %v490_v14 = vsub.f32 %v1859_v7, %v2665_v10 }
  0x7e   :  { %vm159_vm4 = vcmp.eq.s32.totalorder %v1833_v59, %v99_v11  ;;  %vm160_vm5 = vcmp.eq.s32.totalorder %v1833_v59, %v102_v12 }
  0x7f   :  { %v1875_v16 = vsel %vm159_vm4, 1.0, %v2679_v60  ;;  %v1878_v17 = vsel %vm160_vm5, 1.0, %v2679_v60  ;;  %v363_v18 = vand.u32 4294901760, %v362_v13  ;;  %v491_v20 = vand.u32 4294901760, %v490_v14 }
  0x80   :  { %v295_v19 = vsel %vm242_vm1, %v1875_v16, 0  ;;  %1568 = vmatmul.msk.f32.gmra.mxu1 %vm242_vm1, %v1837_v61  ;;  %1584 = vmatmul.msk.f32.gmra.mxu3 %vm242_vm1, %v1875_v16  ;;  %v298_v23 = vsel %vm242_vm1, %v1878_v17, 0  ;;  %v515_v13 = vand.u32 4294901760, %v514_v62 }
  0x81   :  { %v1886_v22 = vsub.f32 %v295_v19, %v295_v19  ;;  %364 = vmatmul.f32.vlgmr.msra.gmra.mxu0 %v363_v18  ;;  %492 = vmatmul.f32.vlgmr.msra.gmra.mxu2 %v491_v20  ;;  %v1896_v26 = vsub.f32 %v298_v23, %v298_v23  ;;  %v66_v18 = vpop.permute.xlu2 %65 }
  0x82   :  { %vm148_vm13 = vcmp.eq.s32.totalorder %v1833_v59, %v66_v18 }
  0x83   :  { %v2663_v25 = vand.u32 4294901760, %v1886_v22  ;;  %v2662_v37 = vand.u32 4294901760, %v1896_v26 }
  0x85   :  { %v54_v28 = vpop.permute.xlu0 %53  ;;  %v108_v29 = vpop.permute.xlu1 %107  ;;  %v498_v31 = vsub.f32 %v1886_v22, %v2663_v25  ;;  %v506_v43 = vsub.f32 %v1896_v26, %v2662_v37 }
  0x86   :  { %vm144_vm8 = vcmp.eq.s32.totalorder %v1833_v59, %v54_v28  ;;  %vm162_vm9 = vcmp.eq.s32.totalorder %v1833_v59, %v108_v29  ;;  %v1994_v28 = vsel %vm148_vm13, 1.0, %v2679_v60 }
  0x87   :  { %v1909_v33 = vsel %vm144_vm8, 1.0, %v2679_v60  ;;  %v499_v34 = vand.u32 4294901760, %v498_v31  ;;  %v1937_v47 = vsel %vm162_vm9, 1.0, %v2679_v60  ;;  %v507_v53 = vand.u32 4294901760, %v506_v43 }
  0x88   :  { %v250_v36 = vsel %vm242_vm1, %v1909_v33, 0  ;;  %1569 = vmatmul.msk.f32.gmra.mxu1 %vm242_vm1, %v1909_v33  ;;  %1585 = vmatmul.msk.f32.gmra.mxu3 %vm242_vm1, %v1878_v17  ;;  %v304_v55 = vsel %vm242_vm1, %v1937_v47, 0 }
  0x89   :  { %v1922_v39 = vsub.f32 %v250_v36, %v250_v36  ;;  %372 = vmatmul.f32.gmra.mxu0 %v371_v30  ;;  %500 = vmatmul.f32.gmra.mxu2 %v499_v34  ;;  %v1959_v58 = vsub.f32 %v304_v55, %v304_v55  ;;  %v1997_v30 = vsel %vm164_vm14, 1.0, %v2679_v60  ;;  %v262_v36 = vsel %vm242_vm1, %v1994_v28, 0 }
  0x8b   :  { %v2674_v41 = vand.u32 4294901760, %v1922_v39  ;;  %v2660_v14 = vand.u32 4294901760, %v1959_v58 }
  0x8d   :  { %v111_v44 = vpop.permute.xlu0 %110  ;;  %v60_v45 = vpop.permute.xlu1 %59  ;;  %v378_v46 = vsub.f32 %v1922_v39, %v2674_v41  ;;  %v522_v24 = vsub.f32 %v1959_v58, %v2660_v14 }
  0x8e   :  { %vm146_vm10 = vcmp.eq.s32.totalorder %v1833_v59, %v60_v45  ;;  %vm163_vm11 = vcmp.eq.s32.totalorder %v1833_v59, %v111_v44  ;;  %v310_v44 = vsel %vm242_vm1, %v1997_v30, 0  ;;  %v2010_v45 = vsub.f32 %v262_v36, %v262_v36 }
  0x8f   :  { %v1941_v49 = vsel %vm146_vm10, 1.0, %v2679_v60  ;;  %v379_v50 = vand.u32 4294901760, %v378_v46  ;;  %v1965_v1 = vsel %vm163_vm11, 1.0, %v2679_v60  ;;  %v523_v38 = vand.u32 4294901760, %v522_v24 }
  0x90   :  { %v256_v52 = vsel %vm242_vm1, %v1941_v49, 0  ;;  %1570 = vmatmul.msk.f32.gmra.mxu1 %vm242_vm1, %v1899_v27  ;;  %1586 = vmatmul.msk.f32.gmra.mxu3 %vm242_vm1, %v1905_v32  ;;  %v307_v19 = vsel %vm242_vm1, %v1965_v1, 0  ;;  %v2016_v48 = vsub.f32 %v310_v44, %v310_v44 }
  0x91   :  { %380 = vmatmul.f32.gmra.mxu0 %v379_v50  ;;  %508 = vmatmul.f32.gmra.mxu2 %v507_v53  ;;  %v1954_v56 = vsub.f32 %v256_v52, %v256_v52  ;;  %v1988_v23 = vsub.f32 %v307_v19, %v307_v19  ;;  %v123_v52 = vpop.permute.xlu2 %122 }
  0x92   :  { %vm167_vm5 = vcmp.eq.s32.totalorder %v1833_v59, %v123_v52 }
  0x93   :  { %v2672_v11 = vand.u32 4294901760, %v1954_v56  ;;  %v2659_v43 = vand.u32 4294901760, %v1988_v23 }
  0x95   :  { %v63_v63 = vpop.permute.xlu0 %62  ;;  %v117_v0 = vpop.permute.xlu1 %116  ;;  %v394_v21 = vsub.f32 %v1954_v56, %v2672_v11  ;;  %v530_v50 = vsub.f32 %v1988_v23, %v2659_v43 }
  0x96   :  { %vm147_vm12 = vcmp.eq.s32.totalorder %v1833_v59, %v63_v63  ;;  %vm165_vm0 = vcmp.eq.s32.totalorder %v1833_v59, %v117_v0  ;;  %v2668_v63 = vand.u32 4294901760, %v2010_v45 }
  0x97   :  { %v1969_v4 = vsel %vm147_vm12, 1.0, %v2679_v60  ;;  %v395_v34 = vand.u32 4294901760, %v394_v21  ;;  %v2025_v55 = vsel %vm165_vm0, 1.0, %v2679_v60 }
  0x98   :  { %v259_v12 = vsel %vm242_vm1, %v1969_v4, 0  ;;  %1571 = vmatmul.msk.f32.gmra.mxu1 %vm242_vm1, %v1941_v49  ;;  %1587 = vmatmul.msk.f32.gmra.mxu3 %vm242_vm1, %v1937_v47  ;;  %v410_v19 = vsub.f32 %v2010_v45, %v2668_v63 }
  0x99   :  { %388 = vmatmul.f32.gmra.mxu0 %v387_v5  ;;  %516 = vmatmul.f32.gmra.mxu2 %v515_v13  ;;  %v1983_v20 = vsub.f32 %v259_v12, %v259_v12  ;;  %v531_v5 = vand.u32 4294901760, %v530_v50  ;;  %v2657_v12 = vand.u32 4294901760, %v2016_v48  ;;  %v313_v13 = vsel %vm242_vm1, %v2025_v55, 0 }
  0x9a   :  { %v2044_v21 = vsub.f32 %v313_v13, %v313_v13 }
  0x9b   :  { %v2671_v35 = vand.u32 4294901760, %v1983_v20  ;;  %v538_v24 = vsub.f32 %v2016_v48, %v2657_v12 }
  0x9d   :  { %v120_v29 = vpop.permute.xlu0 %119  ;;  %v69_v31 = vpop.permute.xlu1 %68  ;;  %v402_v46 = vsub.f32 %v1983_v20, %v2671_v35  ;;  %v539_v50 = vand.u32 4294901760, %v538_v24 }
  0x9e   :  { %vm149_vm15 = vcmp.eq.s32.totalorder %v1833_v59, %v69_v31  ;;  %vm166_vm3 = vcmp.eq.s32.totalorder %v1833_v59, %v120_v29  ;;  %v75_v29 = vpop.permute.xlu2 %74 }
  0x9f   :  { %v2022_v53 = vsel %vm149_vm15, 1.0, %v2679_v60  ;;  %v403_v62 = vand.u32 4294901760, %v402_v46  ;;  %v2053_v36 = vsel %vm166_vm3, 1.0, %v2679_v60  ;;  %vm151_vm4 = vcmp.eq.s32.totalorder %v1833_v59, %v75_v29 }
  0xa0   :  { %1572 = vmatmul.msk.f32.gmra.mxu1 %vm242_vm1, %v1969_v4  ;;  %1588 = vmatmul.msk.f32.gmra.mxu3 %vm242_vm1, %v1965_v1  ;;  %v265_v0 = vsel %vm242_vm1, %v2022_v53, 0  ;;  %v2078_v24 = vsel %vm151_vm4, 1.0, %v2679_v60  ;;  %v2081_v29 = vsel %vm167_vm5, 1.0, %v2679_v60 }
  0xa1   :  { %396 = vmatmul.f32.gmra.mxu0 %v395_v34  ;;  %524 = vmatmul.f32.gmra.mxu2 %v523_v38  ;;  %v2039_v18 = vsub.f32 %v265_v0, %v265_v0  ;;  %v411_v38 = vand.u32 4294901760, %v410_v19  ;;  %2715 = vst [vmem:[#allocation5_spill] sm:$0xff] %v2081_v29  ;;  %v271_v12 = vsel %vm242_vm1, %v2078_v24, 0  ;;  %v319_v43 = vsel %vm242_vm1, %v2081_v29, 0 }
  0xa2   :  { %v2100_v54 = vsub.f32 %v319_v43, %v319_v43 }
  0xa3   :  { %v2667_v44 = vand.u32 4294901760, %v2039_v18 }
  0xa4   :  { %2716 = vst [vmem:[#allocation6_spill] sm:$0xff] %v2100_v54 }
  0xa5   :  { %v72_v57 = vpop.permute.xlu0 %71  ;;  %v126_v34 = vpop.permute.xlu1 %125 }
  0xa6   :  { %vm150_vm2 = vcmp.eq.s32.totalorder %v1833_v59, %v72_v57  ;;  %v2658_v57 = vand.u32 4294901760, %v2044_v21  ;;  %vm168_vm7 = vcmp.eq.s32.totalorder %v1833_v59, %v126_v34  ;;  %v132_v37 = vpop.permute.xlu2 %131 }
  0xa7   :  { %v2050_v31 = vsel %vm150_vm2, 1.0, %v2679_v60  ;;  %vm170_vm11 = vcmp.eq.s32.totalorder %v1833_v59, %v132_v37 }
  0xa8   :  { %1573 = vmatmul.msk.f32.gmra.mxu1 %vm242_vm1, %v1994_v28  ;;  %1589 = vmatmul.msk.f32.gmra.mxu3 %vm242_vm1, %v1997_v30  ;;  %v268_v46 = vsel %vm242_vm1, %v2050_v31, 0  ;;  %v546_v19 = vsub.f32 %v2044_v21, %v2658_v57 }
  0xa9   :  { %404 = vmatmul.f32.gmra.mxu0 %v403_v62  ;;  %532 = vmatmul.f32.gmra.mxu2 %v531_v5  ;;  %v316_v62 = vsel %vm242_vm1, %v2053_v36, 0  ;;  %v2067_v0 = vsub.f32 %v268_v46, %v268_v46  ;;  %v418_v5 = vsub.f32 %v2039_v18, %v2667_v44 }
  0xaa   :  { %v2072_v13 = vsub.f32 %v316_v62, %v316_v62  ;;  %v547_v62 = vand.u32 4294901760, %v546_v19 }
  0xab   :  { %v419_v46 = vand.u32 4294901760, %v418_v5  ;;  %v2094_v5 = vsub.f32 %v271_v12, %v271_v12 }
  0xac   :  { %v2664_v57 = vand.u32 4294901760, %v2072_v13 }
  0xad   :  { %v78_v52 = vpop.permute.xlu1 %77  ;;  %v2669_v34 = vand.u32 4294901760, %v2094_v5 }
  0xae   :  { %vm152_vm6 = vcmp.eq.s32.totalorder %v1833_v59, %v78_v52  ;;  %v554_v19 = vsub.f32 %v2072_v13, %v2664_v57  ;;  %v2109_v52 = vsel %vm168_vm7, 1.0, %v2679_v60  ;;  %v2670_v57 = vand.u32 4294901760, %v2100_v54 }
  0xaf   :  { %2717 = vst [vmem:[#allocation7_spill] sm:$0xff] %v2109_v52  ;;  %v322_v10 = vsel %vm242_vm1, %v2109_v52, 0 }
  0xb0   :  { %1574 = vmatmul.msk.f32.gmra.mxu1 %vm242_vm1, %v2022_v53  ;;  %1590 = vmatmul.msk.f32.gmra.mxu3 %vm242_vm1, %v2025_v55  ;;  %v555_v43 = vand.u32 4294901760, %v554_v19  ;;  %v2128_v44 = vsub.f32 %v322_v10, %v322_v10  ;;  %v562_v19 = vsub.f32 %v2100_v54, %v2670_v57 }
  0xb1   :  { %412 = vmatmul.f32.gmra.mxu0 %v411_v38  ;;  %540 = vmatmul.f32.gmra.mxu2 %v539_v50  ;;  %v129_v38 = vpop.permute.xlu0 %128  ;;  %v2666_v50 = vand.u32 4294901760, %v2067_v0 }
  0xb2   :  { %vm169_vm9 = vcmp.eq.s32.totalorder %v1833_v59, %v129_v38  ;;  %2718 = vst [vmem:[#allocation8_spill] sm:$0xff] %v2128_v44  ;;  %v84_v38 = vpop.permute.xlu2 %83  ;;  %v563_v10 = vand.u32 4294901760, %v562_v19  ;;  %v2676_v57 = vand.u32 4294901760, %v2128_v44 }
  0xb3   :  { %v426_v14 = vsub.f32 %v2067_v0, %v2666_v50  ;;  %v434_v50 = vsub.f32 %v2094_v5, %v2669_v34  ;;  %vm154_vm10 = vcmp.eq.s32.totalorder %v1833_v59, %v84_v38  ;;  %v2165_v38 = vsel %vm170_vm11, 1.0, %v2679_v60 }
  0xb4   :  { %v570_v19 = vsub.f32 %v2128_v44, %v2676_v57  ;;  %v2162_v41 = vsel %vm154_vm10, 1.0, %v2679_v60  ;;  %2721 = vst [vmem:[#allocation11_spill] sm:$0xff] %v2165_v38  ;;  %v328_v15 = vsel %vm242_vm1, %v2165_v38, 0 }
  0xb8   :  { %1575 = vmatmul.msk.f32.gmra.mxu1 %vm242_vm1, %v2050_v31  ;;  %1591 = vmatmul.msk.f32.gmra.mxu3 %vm242_vm1, %v2053_v36 }
  0xb9   :  { %420 = vmatmul.f32.gmra.mxu0 %v419_v46  ;;  %548 = vmatmul.f32.gmra.mxu2 %v547_v62  ;;  %v2106_v46 = vsel %vm152_vm6, 1.0, %v2679_v60  ;;  %v81_v12 = vpop.permute.xlu0 %80  ;;  %v427_v62 = vand.u32 4294901760, %v426_v14 }
  0xba   :  { %v274_v25 = vsel %vm242_vm1, %v2106_v46, 0  ;;  %vm153_vm8 = vcmp.eq.s32.totalorder %v1833_v59, %v81_v12  ;;  %v2137_v12 = vsel %vm169_vm9, 1.0, %v2679_v60 }
  0xbb   :  { %v2123_v14 = vsub.f32 %v274_v25, %v274_v25  ;;  %v2134_v63 = vsel %vm153_vm8, 1.0, %v2679_v60  ;;  %2719 = vst [vmem:[#allocation9_spill] sm:$0xff] %v2137_v12  ;;  %v435_v25 = vand.u32 4294901760, %v434_v50  ;;  %v325_v35 = vsel %vm242_vm1, %v2137_v12, 0 }
  0xbc   :  { %v277_v34 = vsel %vm242_vm1, %v2134_v63, 0  ;;  %v2156_v51 = vsub.f32 %v325_v35, %v325_v35  ;;  %v571_v35 = vand.u32 4294901760, %v570_v19  ;;  %v2184_v60 = vsub.f32 %v328_v15, %v328_v15 }
  0xbd   :  { %v2151_v50 = vsub.f32 %v277_v34, %v277_v34 }
  0xbe   :  { %2720 = vst [vmem:[#allocation10_spill] sm:$0xff] %v2156_v51  ;;  %v2685_v57 = vand.u32 4294901760, %v2156_v51 }
  0xbf   :  { %2722 = vst [vmem:[#allocation12_spill] sm:$0xff] %v2184_v60 }
  0xc0   :  { %1576 = vmatmul.msk.f32.gmra.mxu1 %vm242_vm1, %v2078_v24  ;;  %1592 = vmatmul.msk.f32.gmra.mxu3 %vm242_vm1, %v2081_v29  ;;  %v578_v19 = vsub.f32 %v2156_v51, %v2685_v57  ;;  %v2694_v57 = vand.u32 4294901760, %v2184_v60 }
  0xc1   :  { %428 = vmatmul.f32.gmra.mxu0 %v427_v62  ;;  %556 = vmatmul.f32.gmra.mxu2 %v555_v43  ;;  %v135_v62 = vpop.permute.xlu1 %134  ;;  %v2675_v43 = vand.u32 4294901760, %v2123_v14 }
  0xc2   :  { %vm171_vm13 = vcmp.eq.s32.totalorder %v1833_v59, %v135_v62  ;;  %v579_v15 = vand.u32 4294901760, %v578_v19  ;;  %v586_v19 = vsub.f32 %v2184_v60, %v2694_v57 }
  0xc3   :  { %v442_v11 = vsub.f32 %v2123_v14, %v2675_v43  ;;  %v280_v43 = vsel %vm242_vm1, %v2162_v41, 0 }
  0xc5   :  { %v443_v34 = vand.u32 4294901760, %v442_v11  ;;  %v2178_v11 = vsub.f32 %v280_v43, %v280_v43 }
  0xc7   :  { %v2693_v62 = vand.u32 4294901760, %v2178_v11 }
  0xc8   :  { %1577 = vmatmul.msk.f32.gmra.mxu1 %vm242_vm1, %v2106_v46  ;;  %1593 = vmatmul.msk.f32.gmra.mxu3 %vm242_vm1, %v2109_v52 }
  0xc9   :  { %436 = vmatmul.f32.gmra.mxu0 %v435_v25  ;;  %564 = vmatmul.f32.gmra.mxu2 %v563_v10  ;;  %v138_v25 = vpop.permute.xlu0 %137  ;;  %v87_v37 = vpop.permute.xlu1 %86  ;;  %v2686_v10 = vand.u32 4294901760, %v2151_v50  ;;  %v458_v51 = vsub.f32 %v2178_v11, %v2693_v62 }
  0xca   :  { %vm155_vm12 = vcmp.eq.s32.totalorder %v1833_v59, %v87_v37  ;;  %vm172_vm15 = vcmp.eq.s32.totalorder %v1833_v59, %v138_v25 }
  0xcb   :  { %v450_v9 = vsub.f32 %v2151_v50, %v2686_v10  ;;  %v459_v25 = vand.u32 4294901760, %v458_v51 }
  0xd0   :  { %1578 = vmatmul.msk.f32.gmra.mxu1 %vm242_vm1, %v2134_v63  ;;  %1594 = vmatmul.msk.f32.gmra.mxu3 %vm242_vm1, %v2137_v12  ;;  %v2723_v12 = vmov 0.0  }
  0xd1   :  { %444 = vmatmul.f32.gmra.mxu0 %v443_v34  ;;  %572 = vmatmul.f32.gmra.mxu2 %v571_v35  ;;  %v2190_v52 = vsel %vm155_vm12, 1.0, %v2723_v12  ;;  %v2193_v37 = vsel %vm171_vm13, 1.0, %v2723_v12  ;;  %v90_v43 = vpop.permute.xlu0 %89  ;;  %v451_v34 = vand.u32 4294901760, %v450_v9 }
  0xd2   :  { %2724 = vst [vmem:[#allocation13_spill] sm:$0xff] %v2193_v37  ;;  %v283_v35 = vsel %vm242_vm1, %v2190_v52, 0  ;;  %v331_v10 = vsel %vm242_vm1, %v2193_v37, 0  ;;  %vm156_vm14 = vcmp.eq.s32.totalorder %v1833_v59, %v90_v43  ;;  %v2221_v43 = vsel %vm172_vm15, 1.0, %v2723_v12 }
  0xd3   :  { %v2207_v9 = vsub.f32 %v283_v35, %v283_v35  ;;  %v2212_v44 = vsub.f32 %v331_v10, %v331_v10  ;;  %2725 = vst [vmem:[#allocation14_spill] sm:$0xff] %v2221_v43  ;;  %v587_v10 = vand.u32 4294901760, %v586_v19  ;;  %v334_v60 = vsel %vm242_vm1, %v2221_v43, 0 }
  0xd4   :  { %v2240_v54 = vsub.f32 %v334_v60, %v334_v60 }
  0xd5   :  { %v2704_v35 = vand.u32 4294901760, %v2207_v9  ;;  %v2703_v57 = vand.u32 4294901760, %v2212_v44 }
  0xd7   :  { %v466_v29 = vsub.f32 %v2207_v9, %v2704_v35  ;;  %v594_v19 = vsub.f32 %v2212_v44, %v2703_v57 }
  0xd8   :  { %1579 = vmatmul.msk.f32.gmra.mxu1 %vm242_vm1, %v2162_v41  ;;  %1595 = vmatmul.msk.f32.gmra.mxu3 %vm242_vm1, %v2165_v38  ;;  %v2218_v38 = vsel %vm156_vm14, 1.0, %v2723_v12 }
  0xd9   :  { %452 = vmatmul.f32.gmra.mxu0 %v451_v34  ;;  %580 = vmatmul.f32.gmra.mxu2 %v579_v15  ;;  %v93_v34 = vpop.permute.xlu1 %92  ;;  %v141_v15 = vpop.permute.xlu2 %140  ;;  %v286_v62 = vsel %vm242_vm1, %v2218_v38, 0  ;;  %v595_v60 = vand.u32 4294901760, %v594_v19 }
  0xda   :  { %vm157_vm0 = vcmp.eq.s32.totalorder %v1833_v59, %v93_v34  ;;  %vm173_vm2 = vcmp.eq.s32.totalorder %v1833_v59, %v141_v15  ;;  %v2235_v51 = vsub.f32 %v286_v62, %v286_v62  ;;  %v2707_v15 = vand.u32 4294901760, %v2240_v54 }
  0xdb   :  { %v2249_v34 = vsel %vm173_vm2, 1.0, %v2723_v12 }
  0xdc   :  { %2726 = vst [vmem:[#allocation15_spill] sm:$0xff] %v2249_v34  ;;  %v2708_v59 = vand.u32 4294901760, %v2235_v51  ;;  %v602_v35 = vsub.f32 %v2240_v54, %v2707_v15 }
  0xe0   :  { %1580 = vmatmul.msk.f32.gmra.mxu1 %vm242_vm1, %v2190_v52  ;;  %1596 = vmatmul.msk.f32.gmra.mxu3 %vm242_vm1, %v2193_v37  ;;  %v2246_v37 = vsel %vm157_vm0, 1.0, %v2723_v12  ;;  %v474_v12 = vsub.f32 %v2235_v51, %v2708_v59  ;;  %v2728_v59 = vand.u32 4294901760, %v1861_v8 }
  0xe1   :  { %460 = vmatmul.f32.gmra.mxu0 %v459_v25  ;;  %588 = vmatmul.f32.gmra.mxu2 %v587_v10  ;;  %v467_v25 = vand.u32 4294901760, %v466_v29  ;;  %v289_v62 = vsel %vm242_vm1, %v2246_v37, 0  ;;  %v337_v10 = vsel %vm242_vm1, %v2249_v34, 0 }
  0xe2   :  { %v2261_v29 = vsub.f32 %v289_v62, %v289_v62  ;;  %v2266_v57 = vsub.f32 %v337_v10, %v337_v10  ;;  %v475_v19 = vand.u32 4294901760, %v474_v12 }
  0xe4   :  { %2727 = vst [vmem:[#allocation16_spill] sm:$0xff] %v2266_v57  ;;  %v2712_v62 = vand.u32 4294901760, %v2266_v57 }
  0xe6   :  { %v610_v10 = vsub.f32 %v2266_v57, %v2712_v62  ;;  %v2731_v62 = vand.u32 4294901760, %v1922_v39 }
  0xe8   :  { %1581 = vmatmul.msk.f32.gmra.mxu1 %vm242_vm1, %v2218_v38  ;;  %1597 = vmatmul.msk.f32.gmra.mxu3 %vm242_vm1, %v2221_v43  ;;  %v2709_v43 = vand.u32 4294901760, %v2261_v29 }
  0xe9   :  { %468 = vmatmul.f32.gmra.mxu0 %v467_v25  ;;  %596 = vmatmul.f32.gmra.mxu2 %v595_v60  ;;  %v603_v25 = vand.u32 4294901760, %v602_v35  ;;  %v611_v35 = vand.u32 4294901760, %v610_v10 }
  0xea   :  { %v482_v60 = vsub.f32 %v2261_v29, %v2709_v43 }
  0xec   :  { %v483_v15 = vand.u32 4294901760, %v482_v60 }
  0xf0   :  { %1582 = vmatmul.msk.f32.gmra.mxu1 %vm242_vm1, %v2246_v37  ;;  %1598 = vmatmul.msk.f32.gmra.mxu3 %vm242_vm1, %v2249_v34  ;;  %v2729_v34 = vand.u32 4294901760, %v1857_v6 }
  0xf1   :  { %476 = vmatmul.f32.gmra.mxu0 %v475_v19  ;;  %604 = vmatmul.f32.gmra.mxu2 %v603_v25 }
  0xf5   :  { %v2283_v12 = vpop.f32.mrf.mxu1 }
  0xf8   :  { %989 = vmatmul.f32.vlgmr.msrb.gmra.mxu3 %v2728_v59  ;;  %1631 = vmatmul.msk.f32.vlgmr.msrb.gmra.mxu1 %vm242_vm1, %v1847_v3 }
  0xf9   :  { %484 = vmatmul.f32.gmra.mxu0 %v483_v15  ;;  %612 = vmatmul.f32.gmra.mxu2 %v611_v35 }
  0xfb   :  { %v718_v19 = vpop.f32.mrf.mxu3 }
  0xfd   :  { %v2289_v25 = vpop.f32.mrf.mxu1 }
  0xfe   :  { %v2291_v43 = vpop.f32.mrf.mxu0 }
 0x100   :  { %995 = vmatmul.f32.gmra.mxu3 %v2729_v34  ;;  %1632 = vmatmul.msk.f32.gmra.mxu1 %vm242_vm1, %v1837_v61 }
 0x101   :  { %1599 = vmatmul.msk.f32.vlgmr.msrb.gmra.mxu0 %vm242_vm1, %v1847_v3  ;;  %807 = vmatmul.f32.vlgmr.msrb.gmra.mxu2 %v1861_v8 }
 0x103   :  { %v722_v59 = vpop.f32.mrf.mxu3 }
 0x104   :  { %v493_v60 = vpop.f32.mrf.mxu2 }
 0x105   :  { %v2300_v15 = vpop.f32.mrf.mxu1  ;;  %v2302_v10 = vadd.f32 %v718_v19, %v493_v60  ;;  %v2733_v60 = vand.u32 4294901760, %v1924_v40 }
 0x106   :  { %v2304_v35 = vpop.f32.mrf.mxu0 }
 0x107   :  { %2730 = vst [vmem:[#allocation17_spill] sm:$0xff] %v2302_v10 }
 0x108   :  { %1001 = vmatmul.f32.gmra.mxu3 %v2731_v62  ;;  %1633 = vmatmul.msk.f32.gmra.mxu1 %vm242_vm1, %v1909_v33 }
 0x109   :  { %1600 = vmatmul.msk.f32.gmra.mxu0 %vm242_vm1, %v1837_v61  ;;  %812 = vmatmul.f32.gmra.mxu2 %v1857_v6 }
 0x10b   :  { %v726_v3 = vpop.f32.mrf.mxu3 }
 0x10c   :  { %v501_v8 = vpop.f32.mrf.mxu2 }
 0x10d   :  { %v2313_v34 = vpop.f32.mrf.mxu1  ;;  %v2315_v57 = vadd.f32 %v722_v59, %v501_v8  ;;  %v2735_v8 = vand.u32 4294901760, %v1954_v56 }
 0x10e   :  { %v2317_v19 = vpop.f32.mrf.mxu0 }
 0x10f   :  { %2732 = vst [vmem:[#allocation18_spill] sm:$0xff] %v2315_v57 }
 0x110   :  { %1007 = vmatmul.f32.gmra.mxu3 %v2733_v60  ;;  %1634 = vmatmul.msk.f32.gmra.mxu1 %vm242_vm1, %v1899_v27 }
 0x111   :  { %1601 = vmatmul.msk.f32.gmra.mxu0 %vm242_vm1, %v1909_v33  ;;  %817 = vmatmul.f32.gmra.mxu2 %v1922_v39 }
 0x113   :  { %v730_v61 = vpop.f32.mrf.mxu3 }
 0x114   :  { %v509_v6 = vpop.f32.mrf.mxu2 }
 0x115   :  { %v2326_v62 = vpop.f32.mrf.mxu1  ;;  %v2328_v10 = vadd.f32 %v726_v3, %v509_v6  ;;  %v2737_v6 = vand.u32 4294901760, %v1983_v20 }
 0x116   :  { %v2330_v59 = vpop.f32.mrf.mxu0 }
 0x117   :  { %2734 = vst [vmem:[#allocation19_spill] sm:$0xff] %v2328_v10 }
 0x118   :  { %1013 = vmatmul.f32.gmra.mxu3 %v2735_v8  ;;  %1635 = vmatmul.msk.f32.gmra.mxu1 %vm242_vm1, %v1941_v49 }
 0x119   :  { %1602 = vmatmul.msk.f32.gmra.mxu0 %vm242_vm1, %v1899_v27  ;;  %822 = vmatmul.f32.gmra.mxu2 %v1924_v40 }
 0x11b   :  { %v734_v33 = vpop.f32.mrf.mxu3 }
 0x11c   :  { %v517_v39 = vpop.f32.mrf.mxu2 }
 0x11d   :  { %v2339_v60 = vpop.f32.mrf.mxu1  ;;  %v2341_v57 = vadd.f32 %v730_v61, %v517_v39  ;;  %v2739_v39 = vand.u32 4294901760, %v2010_v45 }
 0x11e   :  { %v2343_v3 = vpop.f32.mrf.mxu0 }
 0x11f   :  { %2736 = vst [vmem:[#allocation20_spill] sm:$0xff] %v2341_v57 }
 0x120   :  { %1019 = vmatmul.f32.gmra.mxu3 %v2737_v6  ;;  %1636 = vmatmul.msk.f32.gmra.mxu1 %vm242_vm1, %v1969_v4 }
 0x121   :  { %1603 = vmatmul.msk.f32.gmra.mxu0 %vm242_vm1, %v1941_v49  ;;  %827 = vmatmul.f32.gmra.mxu2 %v1954_v56 }
 0x123   :  { %v738_v27 = vpop.f32.mrf.mxu3 }
 0x124   :  { %v525_v40 = vpop.f32.mrf.mxu2 }
 0x125   :  { %v2352_v8 = vpop.f32.mrf.mxu1  ;;  %v2354_v10 = vadd.f32 %v734_v33, %v525_v40  ;;  %v2741_v40 = vand.u32 4294901760, %v2039_v18 }
 0x126   :  { %v2356_v61 = vpop.f32.mrf.mxu0 }
 0x127   :  { %2738 = vst [vmem:[#allocation21_spill] sm:$0xff] %v2354_v10 }
 0x128   :  { %1025 = vmatmul.f32.gmra.mxu3 %v2739_v39  ;;  %1637 = vmatmul.msk.f32.gmra.mxu1 %vm242_vm1, %v1994_v28 }
 0x129   :  { %1604 = vmatmul.msk.f32.gmra.mxu0 %vm242_vm1, %v1969_v4  ;;  %832 = vmatmul.f32.gmra.mxu2 %v1983_v20 }
 0x12b   :  { %v742_v49 = vpop.f32.mrf.mxu3 }
 0x12c   :  { %v533_v56 = vpop.f32.mrf.mxu2 }
 0x12d   :  { %v2365_v6 = vpop.f32.mrf.mxu1  ;;  %v2367_v57 = vadd.f32 %v738_v27, %v533_v56  ;;  %v2743_v56 = vand.u32 4294901760, %v2067_v0 }
 0x12e   :  { %v2369_v33 = vpop.f32.mrf.mxu0 }
 0x12f   :  { %2740 = vst [vmem:[#allocation22_spill] sm:$0xff] %v2367_v57 }
 0x130   :  { %1031 = vmatmul.f32.gmra.mxu3 %v2741_v40  ;;  %1638 = vmatmul.msk.f32.gmra.mxu1 %vm242_vm1, %v2022_v53 }
 0x131   :  { %1605 = vmatmul.msk.f32.gmra.mxu0 %vm242_vm1, %v1994_v28  ;;  %837 = vmatmul.f32.gmra.mxu2 %v2010_v45 }
 0x133   :  { %v746_v4 = vpop.f32.mrf.mxu3 }
 0x134   :  { %v541_v20 = vpop.f32.mrf.mxu2 }
 0x135   :  { %v2378_v39 = vpop.f32.mrf.mxu1  ;;  %v2380_v10 = vadd.f32 %v742_v49, %v541_v20  ;;  %v2745_v20 = vand.u32 4294901760, %v2094_v5 }
 0x136   :  { %v2382_v27 = vpop.f32.mrf.mxu0 }
 0x137   :  { %2742 = vst [vmem:[#allocation23_spill] sm:$0xff] %v2380_v10 }
 0x138   :  { %1037 = vmatmul.f32.gmra.mxu3 %v2743_v56  ;;  %1639 = vmatmul.msk.f32.gmra.mxu1 %vm242_vm1, %v2050_v31 }
 0x139   :  { %1606 = vmatmul.msk.f32.gmra.mxu0 %vm242_vm1, %v2022_v53  ;;  %842 = vmatmul.f32.gmra.mxu2 %v2039_v18 }
 0x13b   :  { %v750_v28 = vpop.f32.mrf.mxu3 }
 0x13c   :  { %v549_v45 = vpop.f32.mrf.mxu2 }
 0x13d   :  { %v2391_v40 = vpop.f32.mrf.mxu1  ;;  %v2393_v57 = vadd.f32 %v746_v4, %v549_v45  ;;  %v2747_v45 = vand.u32 4294901760, %v2123_v14 }
 0x13e   :  { %v2395_v49 = vpop.f32.mrf.mxu0 }
 0x13f   :  { %2744 = vst [vmem:[#allocation24_spill] sm:$0xff] %v2393_v57 }
 0x140   :  { %1043 = vmatmul.f32.gmra.mxu3 %v2745_v20  ;;  %1640 = vmatmul.msk.f32.gmra.mxu1 %vm242_vm1, %v2078_v24 }
 0x141   :  { %1607 = vmatmul.msk.f32.gmra.mxu0 %vm242_vm1, %v2050_v31  ;;  %847 = vmatmul.f32.gmra.mxu2 %v2067_v0 }
 0x143   :  { %v754_v53 = vpop.f32.mrf.mxu3 }
 0x144   :  { %v557_v18 = vpop.f32.mrf.mxu2 }
 0x145   :  { %v2404_v56 = vpop.f32.mrf.mxu1  ;;  %v2406_v10 = vadd.f32 %v750_v28, %v557_v18  ;;  %v2749_v18 = vand.u32 4294901760, %v2151_v50 }
 0x146   :  { %v2408_v4 = vpop.f32.mrf.mxu0 }
 0x147   :  { %2746 = vst [vmem:[#allocation25_spill] sm:$0xff] %v2406_v10 }
 0x148   :  { %1049 = vmatmul.f32.gmra.mxu3 %v2747_v45  ;;  %1641 = vmatmul.msk.f32.gmra.mxu1 %vm242_vm1, %v2106_v46 }
 0x149   :  { %1608 = vmatmul.msk.f32.gmra.mxu0 %vm242_vm1, %v2078_v24  ;;  %852 = vmatmul.f32.gmra.mxu2 %v2094_v5 }
 0x14b   :  { %v758_v31 = vpop.f32.mrf.mxu3 }
 0x14c   :  { %v565_v0 = vpop.f32.mrf.mxu2 }
 0x14d   :  { %v2417_v20 = vpop.f32.mrf.mxu1  ;;  %v2419_v57 = vadd.f32 %v754_v53, %v565_v0  ;;  %v2751_v0 = vand.u32 4294901760, %v2178_v11 }
 0x14e   :  { %v2421_v28 = vpop.f32.mrf.mxu0 }
 0x14f   :  { %2748 = vst [vmem:[#allocation26_spill] sm:$0xff] %v2419_v57 }
 0x150   :  { %1055 = vmatmul.f32.gmra.mxu3 %v2749_v18  ;;  %1642 = vmatmul.msk.f32.gmra.mxu1 %vm242_vm1, %v2134_v63 }
 0x151   :  { %1609 = vmatmul.msk.f32.gmra.mxu0 %vm242_vm1, %v2106_v46  ;;  %857 = vmatmul.f32.gmra.mxu2 %v2123_v14 }
 0x153   :  { %v762_v24 = vpop.f32.mrf.mxu3 }
 0x154   :  { %v573_v5 = vpop.f32.mrf.mxu2 }
 0x155   :  { %v2430_v45 = vpop.f32.mrf.mxu1  ;;  %v2432_v10 = vadd.f32 %v758_v31, %v573_v5  ;;  %v2753_v5 = vand.u32 4294901760, %v2207_v9 }
 0x156   :  { %v2434_v53 = vpop.f32.mrf.mxu0 }
 0x157   :  { %2750 = vst [vmem:[#allocation27_spill] sm:$0xff] %v2432_v10 }
 0x158   :  { %1061 = vmatmul.f32.gmra.mxu3 %v2751_v0  ;;  %1643 = vmatmul.msk.f32.gmra.mxu1 %vm242_vm1, %v2162_v41 }
 0x159   :  { %1610 = vmatmul.msk.f32.gmra.mxu0 %vm242_vm1, %v2134_v63  ;;  %862 = vmatmul.f32.gmra.mxu2 %v2151_v50 }
 0x15b   :  { %v766_v46 = vpop.f32.mrf.mxu3 }
 0x15c   :  { %v581_v14 = vpop.f32.mrf.mxu2 }
 0x15d   :  { %v2443_v18 = vpop.f32.mrf.mxu1  ;;  %v2445_v57 = vadd.f32 %v762_v24, %v581_v14  ;;  %v2755_v14 = vand.u32 4294901760, %v2235_v51 }
 0x15e   :  { %v2447_v31 = vpop.f32.mrf.mxu0 }
 0x15f   :  { %2752 = vst [vmem:[#allocation28_spill] sm:$0xff] %v2445_v57 }
 0x160   :  { %1067 = vmatmul.f32.gmra.mxu3 %v2753_v5  ;;  %1644 = vmatmul.msk.f32.gmra.mxu1 %vm242_vm1, %v2190_v52 }
 0x161   :  { %1611 = vmatmul.msk.f32.gmra.mxu0 %vm242_vm1, %v2162_v41  ;;  %867 = vmatmul.f32.gmra.mxu2 %v2178_v11 }
 0x163   :  { %v770_v63 = vpop.f32.mrf.mxu3 }
 0x164   :  { %v589_v50 = vpop.f32.mrf.mxu2 }
 0x165   :  { %v2456_v0 = vpop.f32.mrf.mxu1  ;;  %v2458_v10 = vadd.f32 %v766_v46, %v589_v50  ;;  %v2758_v50 = vand.u32 4294901760, %v2261_v29 }
 0x166   :  { %v2460_v24 = vpop.f32.mrf.mxu0 }
 0x167   :  { %2754 = vst [vmem:[#allocation29_spill] sm:$0xff] %v2458_v10 }
 0x168   :  { %1073 = vmatmul.f32.gmra.mxu3 %v2755_v14  ;;  %1645 = vmatmul.msk.f32.gmra.mxu1 %vm242_vm1, %v2218_v38 }
 0x169   :  { %1612 = vmatmul.msk.f32.gmra.mxu0 %vm242_vm1, %v2190_v52  ;;  %872 = vmatmul.f32.gmra.mxu2 %v2207_v9 }
 0x16b   :  { %v774_v41 = vpop.f32.mrf.mxu3 }
 0x16c   :  { %v597_v11 = vpop.f32.mrf.mxu2 }
 0x16d   :  { %v2469_v5 = vpop.f32.mrf.mxu1  ;;  %v2471_v57 = vadd.f32 %v770_v63, %v597_v11  ;;  %v2760_v11 = vand.u32 4294901760, %v1859_v7 }
 0x16e   :  { %2756 = vst [vmem:[#allocation30_spill] sm:$0xff] %v2469_v5  ;;  %v2473_v46 = vpop.f32.mrf.mxu0  ;;  %v2763_v5 = vand.u32 4294901760, %v1896_v26 }
 0x16f   :  { %2757 = vst [vmem:[#allocation31_spill] sm:$0xff] %v2471_v57 }
 0x170   :  { %1079 = vmatmul.f32.gmra.mxu3 %v2758_v50  ;;  %1646 = vmatmul.msk.f32.gmra.mxu1 %vm242_vm1, %v2246_v37 }
 0x171   :  { %1613 = vmatmul.msk.f32.gmra.mxu0 %vm242_vm1, %v2218_v38  ;;  %877 = vmatmul.f32.gmra.mxu2 %v2235_v51 }
 0x173   :  { %v778_v52 = vpop.f32.mrf.mxu3 }
 0x174   :  { %v605_v9 = vpop.f32.mrf.mxu2 }
 0x175   :  { %v1358_v14 = vpop.f32.mrf.mxu1  ;;  %v2482_v10 = vadd.f32 %v774_v41, %v605_v9  ;;  %v2762_v9 = vand.u32 4294901760, %v1886_v22 }
 0x176   :  { %v2484_v63 = vpop.f32.mrf.mxu0 }
 0x177   :  { %2759 = vst [vmem:[#allocation32_spill] sm:$0xff] %v2482_v10 }
 0x178   :  { %1085 = vmatmul.f32.gmra.mxu3 %v2760_v11  ;;  %1647 = vmatmul.msk.f32.gmra.mxu1 %vm242_vm1, %v1844_v2 }
 0x179   :  { %1614 = vmatmul.msk.f32.gmra.mxu0 %vm242_vm1, %v2246_v37  ;;  %882 = vmatmul.f32.gmra.mxu2 %v2261_v29  ;;  %v655_v29 = vadd.f32 %v2283_v12, %v2291_v43  ;;  %v659_v43 = vadd.f32 %v2289_v25, %v2304_v35 }
 0x17b   :  { %v990_v38 = vpop.f32.mrf.mxu3 }
 0x17c   :  { %v613_v51 = vpop.f32.mrf.mxu2 }
 0x17d   :  { %v1362_v50 = vpop.f32.mrf.mxu1  ;;  %v2493_v57 = vadd.f32 %v778_v52, %v613_v51 }
 0x17e   :  { %v1209_v41 = vpop.f32.mrf.mxu0 }
 0x17f   :  { %2761 = vst [vmem:[#allocation33_spill] sm:$0xff] %v2493_v57 }
 0x180   :  { %1091 = vmatmul.f32.gmra.mxu3 %v2762_v9  ;;  %1648 = vmatmul.msk.f32.gmra.mxu1 %vm242_vm1, %v1875_v16 }
 0x181   :  { %1615 = vmatmul.msk.f32.gmra.mxu0 %vm242_vm1, %v1844_v2  ;;  %887 = vmatmul.f32.gmra.mxu2 %v1859_v7 }
 0x183   :  { %v996_v37 = vpop.f32.mrf.mxu3 }
 0x184   :  { %v808_v11 = vpop.f32.mrf.mxu2 }
 0x185   :  { %v1366_v10 = vpop.f32.mrf.mxu1  ;;  %v809_v52 = vadd.f32 %v808_v11, %v655_v29 }
 0x186   :  { %v1213_v51 = vpop.f32.mrf.mxu0 }
 0x187   :  { %v991_v57 = vadd.f32 %v990_v38, %v809_v52  ;;  %v2764_v52 = vand.u32 4294901760, %v1928_v42 }
 0x188   :  { %1097 = vmatmul.f32.gmra.mxu3 %v2763_v5  ;;  %1649 = vmatmul.msk.f32.gmra.mxu1 %vm242_vm1, %v1878_v17 }
 0x189   :  { %1616 = vmatmul.msk.f32.gmra.mxu0 %vm242_vm1, %v1875_v16  ;;  %v1210_v2 = vadd.f32 %v1209_v41, %v991_v57  ;;  %892 = vmatmul.f32.gmra.mxu2 %v1886_v22  ;;  %v663_v57 = vadd.f32 %v2300_v15, %v2317_v19  ;;  %v667_v15 = vadd.f32 %v2313_v34, %v2330_v59 }
 0x18b   :  { %v1002_v7 = vpop.f32.mrf.mxu3  ;;  %v1359_v12 = vadd.f32 %v1358_v14, %v1210_v2 }
 0x18c   :  { %v813_v9 = vpop.f32.mrf.mxu2 }
 0x18d   :  { %v1370_v29 = vpop.f32.mrf.mxu1  ;;  %1485 = vst [vmem:[#allocation2] sm:$0xff] %v1359_v12  ;;  %v814_v38 = vadd.f32 %v813_v9, %v659_v43  ;;  %v2765_v43 = vand.u32 4294901760, %v1959_v58 }
 0x18e   :  { %v1217_v11 = vpop.f32.mrf.mxu0 }
 0x18f   :  { %v997_v5 = vadd.f32 %v996_v37, %v814_v38  ;;  %v2766_v38 = vand.u32 4294901760, %v1988_v23 }
 0x190   :  { %1103 = vmatmul.f32.gmra.mxu3 %v2764_v52  ;;  %1650 = vmatmul.msk.f32.gmra.mxu1 %vm242_vm1, %v1905_v32 }
 0x191   :  { %1617 = vmatmul.msk.f32.gmra.mxu0 %vm242_vm1, %v1878_v17  ;;  %v1214_v16 = vadd.f32 %v1213_v51, %v997_v5  ;;  %897 = vmatmul.f32.gmra.mxu2 %v1896_v26 }
 0x193   :  { %v1008_v22 = vpop.f32.mrf.mxu3  ;;  %v1363_v25 = vadd.f32 %v1362_v50, %v1214_v16 }
 0x194   :  { %v818_v35 = vpop.f32.mrf.mxu2 }
 0x195   :  { %v1374_v14 = vpop.f32.mrf.mxu1  ;;  %1486 = vst [vmem:[#allocation2 + $0x8] sm:$0xff] %v1363_v25  ;;  %v819_v41 = vadd.f32 %v818_v35, %v663_v57 }
 0x196   :  { %v1221_v37 = vpop.f32.mrf.mxu0 }
 0x197   :  { %v1003_v2 = vadd.f32 %v1002_v7, %v819_v41 }
 0x198   :  { %1109 = vmatmul.f32.gmra.mxu3 %v2765_v43  ;;  %1651 = vmatmul.msk.f32.gmra.mxu1 %vm242_vm1, %v1937_v47 }
 0x199   :  { %1618 = vmatmul.msk.f32.gmra.mxu0 %vm242_vm1, %v1905_v32  ;;  %v1218_v17 = vadd.f32 %v1217_v11, %v1003_v2  ;;  %902 = vmatmul.f32.gmra.mxu2 %v1928_v42 }
 0x19b   :  { %v1014_v26 = vpop.f32.mrf.mxu3  ;;  %v1367_v19 = vadd.f32 %v1366_v10, %v1218_v17  ;;  %v671_v10 = vadd.f32 %v2326_v62, %v2343_v3  ;;  %v675_v62 = vadd.f32 %v2339_v60, %v2356_v61  ;;  %v679_v60 = vadd.f32 %v2352_v8, %v2369_v33 }
 0x19c   :  { %v823_v50 = vpop.f32.mrf.mxu2  ;;  %v683_v8 = vadd.f32 %v2365_v6, %v2382_v27  ;;  %v687_v6 = vadd.f32 %v2378_v39, %v2395_v49  ;;  %v691_v39 = vadd.f32 %v2391_v40, %v2408_v4  ;;  %v695_v4 = vadd.f32 %v2404_v56, %v2421_v28 }
 0x19d   :  { %v1378_v51 = vpop.f32.mrf.mxu1  ;;  %1487 = vst [vmem:[#allocation2 + $0x10] sm:$0xff] %v1367_v19  ;;  %v824_v7 = vadd.f32 %v823_v50, %v667_v15  ;;  %v2769_v15 = vand.u32 4294901760, %v2072_v13  ;;  %v699_v28 = vadd.f32 %v2417_v20, %v2434_v53  ;;  %v703_v53 = vadd.f32 %v2430_v45, %v2447_v31 }
 0x19e   :  { %v1225_v12 = vpop.f32.mrf.mxu0  ;;  %v707_v31 = vadd.f32 %v2443_v18, %v2460_v24  ;;  %v711_v24 = vadd.f32 %v2456_v0, %v2473_v46 }
 0x19f   :  { %v1009_v9 = vadd.f32 %v1008_v22, %v824_v7  ;;  %v2767_v22 = vand.u32 4294901760, %v2016_v48 }
 0x1a0   :  { %1115 = vmatmul.f32.gmra.mxu3 %v2766_v38  ;;  %1652 = vmatmul.msk.f32.gmra.mxu1 %vm242_vm1, %v1965_v1 }
 0x1a1   :  { %1619 = vmatmul.msk.f32.gmra.mxu0 %vm242_vm1, %v1937_v47  ;;  %v1222_v32 = vadd.f32 %v1221_v37, %v1009_v9  ;;  %907 = vmatmul.f32.gmra.mxu2 %v1959_v58  ;;  %v2768_v37 = vand.u32 4294901760, %v2044_v21  ;;  %v2770_v9 = vld [vmem:[#allocation6_spill] sm:$0xff] }
 0x1a2   :  { %v2771_v38 = vand.u32 4294901760, %v2770_v9 }
 0x1a3   :  { %v1020_v42 = vpop.f32.mrf.mxu3  ;;  %v1371_v34 = vadd.f32 %v1370_v29, %v1222_v32  ;;  %v2772_v32 = vld [vmem:[#allocation5_spill] sm:$0xff] }
 0x1a4   :  { %v828_v59 = vpop.f32.mrf.mxu2 }
 0x1a5   :  { %v1382_v11 = vpop.f32.mrf.mxu1  ;;  %1488 = vst [vmem:[#allocation2 + $0x18] sm:$0xff] %v1371_v34  ;;  %v829_v5 = vadd.f32 %v828_v59, %v671_v10 }
 0x1a6   :  { %v1229_v52 = vpop.f32.mrf.mxu0 }
 0x1a7   :  { %v1015_v16 = vadd.f32 %v1014_v26, %v829_v5  ;;  %v2773_v5 = vld [vmem:[#allocation8_spill] sm:$0xff] }
 0x1a8   :  { %1121 = vmatmul.f32.gmra.mxu3 %v2767_v22  ;;  %1653 = vmatmul.msk.f32.gmra.mxu1 %vm242_vm1, %v1997_v30 }
 0x1a9   :  { %1620 = vmatmul.msk.f32.gmra.mxu0 %vm242_vm1, %v1965_v1  ;;  %v1226_v47 = vadd.f32 %v1225_v12, %v1015_v16  ;;  %912 = vmatmul.f32.gmra.mxu2 %v1988_v23  ;;  %v2775_v16 = vld [vmem:[#allocation7_spill] sm:$0xff] }
 0x1ab   :  { %v1026_v58 = vpop.f32.mrf.mxu3  ;;  %v1375_v3 = vadd.f32 %v1374_v14, %v1226_v47 }
 0x1ac   :  { %v833_v29 = vpop.f32.mrf.mxu2 }
 0x1ad   :  { %v1386_v57 = vpop.f32.mrf.mxu1  ;;  %1489 = vst [vmem:[#allocation2 + $0x20] sm:$0xff] %v1375_v3  ;;  %v834_v25 = vadd.f32 %v833_v29, %v675_v62  ;;  %v2776_v29 = vld [vmem:[#allocation10_spill] sm:$0xff] }
 0x1ae   :  { %v1233_v35 = vpop.f32.mrf.mxu0 }
 0x1af   :  { %v1021_v41 = vadd.f32 %v1020_v42, %v834_v25  ;;  %v2778_v25 = vld [vmem:[#allocation9_spill] sm:$0xff] }
 0x1b0   :  { %1127 = vmatmul.f32.gmra.mxu3 %v2768_v37  ;;  %1654 = vmatmul.msk.f32.gmra.mxu1 %vm242_vm1, %v2025_v55 }
 0x1b1   :  { %1621 = vmatmul.msk.f32.gmra.mxu0 %vm242_vm1, %v1997_v30  ;;  %v1230_v1 = vadd.f32 %v1229_v52, %v1021_v41  ;;  %917 = vmatmul.f32.gmra.mxu2 %v2016_v48  ;;  %v2774_v52 = vand.u32 4294901760, %v2773_v5 }
 0x1b3   :  { %v1032_v23 = vpop.f32.mrf.mxu3  ;;  %v1379_v61 = vadd.f32 %v1378_v51, %v1230_v1 }
 0x1b4   :  { %v838_v14 = vpop.f32.mrf.mxu2 }
 0x1b5   :  { %v1390_v2 = vpop.f32.mrf.mxu1  ;;  %1490 = vst [vmem:[#allocation2 + $0x28] sm:$0xff] %v1379_v61  ;;  %v839_v43 = vadd.f32 %v838_v14, %v679_v60  ;;  %v2779_v14 = vld [vmem:[#allocation12_spill] sm:$0xff] }
 0x1b6   :  { %v1237_v17 = vpop.f32.mrf.mxu0 }
 0x1b7   :  { %v1027_v26 = vadd.f32 %v1026_v58, %v839_v43  ;;  %v2781_v43 = vld [vmem:[#allocation11_spill] sm:$0xff] }
 0x1b8   :  { %1133 = vmatmul.f32.gmra.mxu3 %v2769_v15  ;;  %1655 = vmatmul.msk.f32.gmra.mxu1 %vm242_vm1, %v2053_v36 }
 0x1b9   :  { %1622 = vmatmul.msk.f32.gmra.mxu0 %vm242_vm1, %v2025_v55  ;;  %v1234_v30 = vadd.f32 %v1233_v35, %v1027_v26  ;;  %922 = vmatmul.f32.gmra.mxu2 %v2044_v21 }
 0x1bb   :  { %v1038_v48 = vpop.f32.mrf.mxu3  ;;  %v1383_v33 = vadd.f32 %v1382_v11, %v1234_v30 }
 0x1bc   :  { %v843_v19 = vpop.f32.mrf.mxu2 }
 0x1bd   :  { %v1394_v50 = vpop.f32.mrf.mxu1  ;;  %1491 = vst [vmem:[#allocation2 + $0x30] sm:$0xff] %v1383_v33  ;;  %v844_v51 = vadd.f32 %v843_v19, %v683_v8  ;;  %v2782_v19 = vand.u32 4294901760, %v2212_v44 }
 0x1be   :  { %v1241_v7 = vpop.f32.mrf.mxu0 }
 0x1bf   :  { %v1033_v12 = vadd.f32 %v1032_v23, %v844_v51 }
 0x1c0   :  { %1139 = vmatmul.f32.gmra.mxu3 %v2771_v38  ;;  %1656 = vmatmul.msk.f32.gmra.mxu1 %vm242_vm1, %v2772_v32 }
 0x1c1   :  { %1623 = vmatmul.msk.f32.gmra.mxu0 %vm242_vm1, %v2053_v36  ;;  %v1238_v55 = vadd.f32 %v1237_v17, %v1033_v12  ;;  %927 = vmatmul.f32.gmra.mxu2 %v2072_v13 }
 0x1c3   :  { %v1044_v21 = vpop.f32.mrf.mxu3  ;;  %v1387_v27 = vadd.f32 %v1386_v57, %v1238_v55  ;;  %v2777_v57 = vand.u32 4294901760, %v2776_v29 }
 0x1c4   :  { %v848_v42 = vpop.f32.mrf.mxu2 }
 0x1c5   :  { %v1398_v10 = vpop.f32.mrf.mxu1  ;;  %1492 = vst [vmem:[#allocation2 + $0x38] sm:$0xff] %v1387_v27  ;;  %v849_v34 = vadd.f32 %v848_v42, %v687_v6  ;;  %v2785_v6 = vld [vmem:[#allocation14_spill] sm:$0xff] }
 0x1c6   :  { %v1245_v59 = vpop.f32.mrf.mxu0 }
 0x1c7   :  { %v1039_v11 = vadd.f32 %v1038_v48, %v849_v34 }
 0x1c8   :  { %1145 = vmatmul.f32.gmra.mxu3 %v2774_v52  ;;  %1657 = vmatmul.msk.f32.gmra.mxu1 %vm242_vm1, %v2775_v16  ;;  %v2786_v52 = vld [vmem:[#allocation16_spill] sm:$0xff] }
 0x1c9   :  { %1624 = vmatmul.msk.f32.gmra.mxu0 %vm242_vm1, %v2772_v32  ;;  %v1242_v36 = vadd.f32 %v1241_v7, %v1039_v11  ;;  %932 = vmatmul.f32.gmra.mxu2 %v2770_v9 }
 0x1cb   :  { %v1050_v13 = vpop.f32.mrf.mxu3  ;;  %v1391_v49 = vadd.f32 %v1390_v2, %v1242_v36  ;;  %v2780_v2 = vand.u32 4294901760, %v2779_v14  ;;  %v2788_v36 = vld [vmem:[#allocation15_spill] sm:$0xff] }
 0x1cc   :  { %v853_v22 = vpop.f32.mrf.mxu2 }
 0x1cd   :  { %v1402_v47 = vpop.f32.mrf.mxu1  ;;  %1493 = vst [vmem:[#allocation2 + $0x40] sm:$0xff] %v1391_v49  ;;  %v854_v58 = vadd.f32 %v853_v22, %v691_v39 }
 0x1ce   :  { %v1249_v62 = vpop.f32.mrf.mxu0 }
 0x1cf   :  { %v1045_v3 = vadd.f32 %v1044_v21, %v854_v58  ;;  %v2784_v21 = vand.u32 4294901760, %v2240_v54 }
 0x1d0   :  { %1151 = vmatmul.f32.gmra.mxu3 %v2777_v57  ;;  %1658 = vmatmul.msk.f32.gmra.mxu1 %vm242_vm1, %v2778_v25 }
 0x1d1   :  { %1625 = vmatmul.msk.f32.gmra.mxu0 %vm242_vm1, %v2775_v16  ;;  %v1246_v35 = vadd.f32 %v1245_v59, %v1045_v3  ;;  %937 = vmatmul.f32.gmra.mxu2 %v2773_v5  ;;  %v2787_v16 = vand.u32 4294901760, %v2786_v52 }
 0x1d3   :  { %v1056_v40 = vpop.f32.mrf.mxu3  ;;  %v1395_v41 = vadd.f32 %v1394_v50, %v1246_v35  ;;  %v2783_v50 = vld [vmem:[#allocation13_spill] sm:$0xff] }
 0x1d4   :  { %v858_v37 = vpop.f32.mrf.mxu2 }
 0x1d5   :  { %v1406_v1 = vpop.f32.mrf.mxu1  ;;  %1494 = vst [vmem:[#allocation2 + $0x48] sm:$0xff] %v1395_v41  ;;  %v859_v23 = vadd.f32 %v858_v37, %v695_v4 }
 0x1d6   :  { %v1253_v60 = vpop.f32.mrf.mxu0 }
 0x1d7   :  { %v1051_v61 = vadd.f32 %v1050_v13, %v859_v23 }
 0x1d8   :  { %1157 = vmatmul.f32.gmra.mxu3 %v2780_v2  ;;  %1659 = vmatmul.msk.f32.gmra.mxu1 %vm242_vm1, %v2781_v43 }
 0x1d9   :  { %1626 = vmatmul.msk.f32.gmra.mxu0 %vm242_vm1, %v2778_v25  ;;  %v1250_v17 = vadd.f32 %v1249_v62, %v1051_v61  ;;  %942 = vmatmul.f32.gmra.mxu2 %v2776_v29 }
 0x1db   :  { %v1062_v56 = vpop.f32.mrf.mxu3  ;;  %v1399_v26 = vadd.f32 %v1398_v10, %v1250_v17 }
 0x1dc   :  { %v863_v15 = vpop.f32.mrf.mxu2 }
 0x1dd   :  { %v1410_v30 = vpop.f32.mrf.mxu1  ;;  %1495 = vst [vmem:[#allocation2 + $0x50] sm:$0xff] %v1399_v26  ;;  %v864_v48 = vadd.f32 %v863_v15, %v699_v28  ;;  %v2791_v26 = vld [vmem:[#allocation18_spill] sm:$0xff] }
 0x1de   :  { %v1257_v8 = vpop.f32.mrf.mxu0 }
 0x1df   :  { %v1057_v33 = vadd.f32 %v1056_v40, %v864_v48 }
 0x1e0   :  { %1163 = vmatmul.f32.gmra.mxu3 %v2782_v19  ;;  %1660 = vmatmul.msk.f32.gmra.mxu1 %vm242_vm1, %v2783_v50 }
 0x1e1   :  { %1627 = vmatmul.msk.f32.gmra.mxu0 %vm242_vm1, %v2781_v43  ;;  %v1254_v51 = vadd.f32 %v1253_v60, %v1057_v33  ;;  %947 = vmatmul.f32.gmra.mxu2 %v2779_v14  ;;  %v2790_v60 = vld [vmem:[#allocation17_spill] sm:$0xff] }
 0x1e3   :  { %v1068_v20 = vpop.f32.mrf.mxu3  ;;  %v1403_v7 = vadd.f32 %v1402_v47, %v1254_v51 }
 0x1e4   :  { %v868_v12 = vpop.f32.mrf.mxu2 }
 0x1e5   :  { %v1414_v9 = vpop.f32.mrf.mxu1  ;;  %1496 = vst [vmem:[#allocation2 + $0x58] sm:$0xff] %v1403_v7  ;;  %v869_v38 = vadd.f32 %v868_v12, %v703_v53 }
 0x1e6   :  { %v1261_v32 = vpop.f32.mrf.mxu0 }
 0x1e7   :  { %v1063_v55 = vadd.f32 %v1062_v56, %v869_v38 }
 0x1e8   :  { %1169 = vmatmul.f32.gmra.mxu3 %v2784_v21  ;;  %1661 = vmatmul.msk.f32.gmra.mxu1 %vm242_vm1, %v2785_v6  ;;  %v2793_v21 = vld [vmem:[#allocation20_spill] sm:$0xff] }
 0x1e9   :  { %1628 = vmatmul.msk.f32.gmra.mxu0 %vm242_vm1, %v2783_v50  ;;  %v1258_v27 = vadd.f32 %v1257_v8, %v1063_v55  ;;  %952 = vmatmul.f32.gmra.mxu2 %v2212_v44 }
 0x1eb   :  { %v1074_v45 = vpop.f32.mrf.mxu3  ;;  %v1407_v42 = vadd.f32 %v1406_v1, %v1258_v27 }
 0x1ec   :  { %v873_v10 = vpop.f32.mrf.mxu2 }
 0x1ed   :  { %v1418_v34 = vpop.f32.mrf.mxu1  ;;  %1497 = vst [vmem:[#allocation2 + $0x60] sm:$0xff] %v1407_v42  ;;  %v874_v59 = vadd.f32 %v873_v10, %v707_v31 }
 0x1ee   :  { %v1265_v11 = vpop.f32.mrf.mxu0 }
 0x1ef   :  { %v1069_v5 = vadd.f32 %v1068_v20, %v874_v59  ;;  %v2792_v20 = vld [vmem:[#allocation19_spill] sm:$0xff] }
 0x1f0   :  { %1175 = vmatmul.f32.gmra.mxu3 %v2787_v16  ;;  %1662 = vmatmul.msk.f32.gmra.mxu1 %vm242_vm1, %v2788_v36 }
 0x1f1   :  { %1629 = vmatmul.msk.f32.gmra.mxu0 %vm242_vm1, %v2785_v6  ;;  %v1262_v44 = vadd.f32 %v1261_v32, %v1069_v5  ;;  %957 = vmatmul.f32.gmra.mxu2 %v2240_v54  ;;  %v2789_v54 = vld [vmem:[#allocation30_spill] sm:$0xff] }
 0x1f2   :  { %v715_v29 = vadd.f32 %v2789_v54, %v2484_v63 }
 0x1f3   :  { %v1080_v18 = vpop.f32.mrf.mxu3  ;;  %v1411_v13 = vadd.f32 %v1410_v30, %v1262_v44 }
 0x1f4   :  { %v878_v39 = vpop.f32.mrf.mxu2 }
 0x1f5   :  { %v1422_v49 = vpop.f32.mrf.mxu1  ;;  %1498 = vst [vmem:[#allocation2 + $0x68] sm:$0xff] %v1411_v13  ;;  %v879_v22 = vadd.f32 %v878_v39, %v711_v24  ;;  %v2795_v39 = vld [vmem:[#allocation22_spill] sm:$0xff] }
 0x1f6   :  { %v1269_v47 = vpop.f32.mrf.mxu0 }
 0x1f7   :  { %v1075_v58 = vadd.f32 %v1074_v45, %v879_v22 }
 0x1f9   :  { %1630 = vmatmul.msk.f32.gmra.mxu0 %vm242_vm1, %v2788_v36  ;;  %v1266_v62 = vadd.f32 %v1265_v11, %v1075_v58  ;;  %962 = vmatmul.f32.gmra.mxu2 %v2786_v52  ;;  %v2794_v11 = vld [vmem:[#allocation21_spill] sm:$0xff] }
 0x1fb   :  { %v1086_v3 = vpop.f32.mrf.mxu3  ;;  %v1415_v57 = vadd.f32 %v1414_v9, %v1266_v62 }
 0x1fc   :  { %v883_v25 = vpop.f32.mrf.mxu2 }
 0x1fd   :  { %v1426_v0 = vpop.f32.mrf.mxu1  ;;  %1499 = vst [vmem:[#allocation2 + $0x70] sm:$0xff] %v1415_v57  ;;  %v884_v46 = vadd.f32 %v883_v25, %v715_v29  ;;  %v2796_v57 = vld [vmem:[#allocation23_spill] sm:$0xff] }
 0x1fe   :  { %v1273_v35 = vpop.f32.mrf.mxu0 }
 0x1ff   :  { %v1081_v40 = vadd.f32 %v1080_v18, %v884_v46 }
 0x201   :  { %v1270_v4 = vadd.f32 %v1269_v47, %v1081_v40 }
 0x203   :  { %v1092_v41 = vpop.f32.mrf.mxu3  ;;  %v1419_v37 = vadd.f32 %v1418_v34, %v1270_v4 }
 0x204   :  { %v888_v1 = vpop.f32.mrf.mxu2 }
 0x205   :  { %v1430_v23 = vpop.f32.mrf.mxu1  ;;  %1500 = vst [vmem:[#allocation2 + $0x78] sm:$0xff] %v1419_v37  ;;  %v889_v61 = vadd.f32 %v888_v1, %v2790_v60  ;;  %v2797_v1 = vld [vmem:[#allocation24_spill] sm:$0xff] }
 0x206   :  { %v1277_v14 = vpop.f32.mrf.mxu0 }
 0x207   :  { %v1087_v2 = vadd.f32 %v1086_v3, %v889_v61 }
 0x209   :  { %v1274_v43 = vadd.f32 %v1273_v35, %v1087_v2 }
 0x20b   :  { %v1098_v17 = vpop.f32.mrf.mxu3  ;;  %v1423_v63 = vadd.f32 %v1422_v49, %v1274_v43 }
 0x20c   :  { %v893_v56 = vpop.f32.mrf.mxu2 }
 0x20d   :  { %v1434_v28 = vpop.f32.mrf.mxu1  ;;  %1501 = vst [vmem:[#allocation2 + $0x80] sm:$0xff] %v1423_v63  ;;  %v894_v15 = vadd.f32 %v893_v56, %v2791_v26  ;;  %v2798_v63 = vld [vmem:[#allocation25_spill] sm:$0xff] }
 0x20e   :  { %v1281_v30 = vpop.f32.mrf.mxu0 }
 0x20f   :  { %v1093_v48 = vadd.f32 %v1092_v41, %v894_v15 }
 0x211   :  { %v1278_v8 = vadd.f32 %v1277_v14, %v1093_v48 }
 0x213   :  { %v1104_v33 = vpop.f32.mrf.mxu3  ;;  %v1427_v19 = vadd.f32 %v1426_v0, %v1278_v8 }
 0x214   :  { %v898_v50 = vpop.f32.mrf.mxu2 }
 0x215   :  { %v1438_v51 = vpop.f32.mrf.mxu1  ;;  %1502 = vst [vmem:[#allocation2 + $0x88] sm:$0xff] %v1427_v19  ;;  %v899_v53 = vadd.f32 %v898_v50, %v2792_v20  ;;  %v2799_v19 = vld [vmem:[#allocation26_spill] sm:$0xff] }
 0x216   :  { %v1285_v7 = vpop.f32.mrf.mxu0 }
 0x217   :  { %v1099_v12 = vadd.f32 %v1098_v17, %v899_v53 }
 0x219   :  { %v1282_v9 = vadd.f32 %v1281_v30, %v1099_v12 }
 0x21b   :  { %v1110_v38 = vpop.f32.mrf.mxu3  ;;  %v1431_v32 = vadd.f32 %v1430_v23, %v1282_v9 }
 0x21c   :  { %v903_v55 = vpop.f32.mrf.mxu2 }
 0x21d   :  { %1503 = vst [vmem:[#allocation2 + $0x90] sm:$0xff] %v1431_v32  ;;  %v904_v6 = vadd.f32 %v903_v55, %v2793_v21  ;;  %v1442_v45 = vpop.f32.mrf.mxu1 }
 0x21e   :  { %v1289_v27 = vpop.f32.mrf.mxu0 }
 0x21f   :  { %v1105_v31 = vadd.f32 %v1104_v33, %v904_v6 }
 0x221   :  { %v1286_v42 = vadd.f32 %v1285_v7, %v1105_v31 }
 0x223   :  { %v1116_v10 = vpop.f32.mrf.mxu3  ;;  %v1435_v34 = vadd.f32 %v1434_v28, %v1286_v42 }
 0x224   :  { %v908_v59 = vpop.f32.mrf.mxu2 }
 0x225   :  { %1504 = vst [vmem:[#allocation2 + $0x98] sm:$0xff] %v1435_v34  ;;  %v909_v5 = vadd.f32 %v908_v59, %v2794_v11  ;;  %v1446_v36 = vpop.f32.mrf.mxu1 }
 0x226   :  { %v1293_v52 = vpop.f32.mrf.mxu0 }
 0x227   :  { %v1111_v16 = vadd.f32 %v1110_v38, %v909_v5  ;;  %v2800_v38 = vld [vmem:[#allocation27_spill] sm:$0xff] }
 0x229   :  { %v1290_v44 = vadd.f32 %v1289_v27, %v1111_v16 }
 0x22b   :  { %v1122_v18 = vpop.f32.mrf.mxu3  ;;  %v1439_v24 = vadd.f32 %v1438_v51, %v1290_v44 }
 0x22c   :  { %v913_v13 = vpop.f32.mrf.mxu2 }
 0x22d   :  { %1505 = vst [vmem:[#allocation2 + $0xa0] sm:$0xff] %v1439_v24  ;;  %v914_v49 = vadd.f32 %v913_v13, %v2795_v39  ;;  %v1450_v62 = vpop.f32.mrf.mxu1 }
 0x22e   :  { %v1297_v22 = vpop.f32.mrf.mxu0 }
 0x22f   :  { %v1117_v47 = vadd.f32 %v1116_v10, %v914_v49  ;;  %v2801_v10 = vld [vmem:[#allocation28_spill] sm:$0xff] }
 0x231   :  { %v1294_v58 = vadd.f32 %v1293_v52, %v1117_v47 }
 0x233   :  { %v1128_v3 = vpop.f32.mrf.mxu3  ;;  %v1443_v54 = vadd.f32 %v1442_v45, %v1294_v58 }
 0x234   :  { %v918_v29 = vpop.f32.mrf.mxu2 }
 0x235   :  { %1506 = vst [vmem:[#allocation2 + $0xa8] sm:$0xff] %v1443_v54  ;;  %v919_v25 = vadd.f32 %v918_v29, %v2796_v57  ;;  %v1454_v41 = vpop.f32.mrf.mxu1 }
 0x236   :  { %v1301_v0 = vpop.f32.mrf.mxu0 }
 0x237   :  { %v1123_v46 = vadd.f32 %v1122_v18, %v919_v25  ;;  %v2802_v18 = vld [vmem:[#allocation29_spill] sm:$0xff] }
 0x239   :  { %v1298_v35 = vadd.f32 %v1297_v22, %v1123_v46 }
 0x23b   :  { %v1134_v40 = vpop.f32.mrf.mxu3  ;;  %v1447_v4 = vadd.f32 %v1446_v36, %v1298_v35  ;;  %v2804_v35 = vld [vmem:[#allocation32_spill] sm:$0xff] }
 0x23c   :  { %v923_v37 = vpop.f32.mrf.mxu2 }
 0x23d   :  { %1507 = vst [vmem:[#allocation2 + $0xb0] sm:$0xff] %v1447_v4  ;;  %v924_v23 = vadd.f32 %v923_v37, %v2797_v1  ;;  %v1458_v26 = vpop.f32.mrf.mxu1 }
 0x23e   :  { %v1305_v60 = vpop.f32.mrf.mxu0 }
 0x23f   :  { %v1129_v61 = vadd.f32 %v1128_v3, %v924_v23 }
 0x241   :  { %v1302_v14 = vadd.f32 %v1301_v0, %v1129_v61  ;;  %v2805_v61 = vld [vmem:[#allocation33_spill] sm:$0xff] }
 0x243   :  { %v1140_v2 = vpop.f32.mrf.mxu3  ;;  %v1451_v43 = vadd.f32 %v1450_v62, %v1302_v14  ;;  %v2803_v62 = vld [vmem:[#allocation31_spill] sm:$0xff] }
 0x244   :  { %v928_v17 = vpop.f32.mrf.mxu2 }
 0x245   :  { %1508 = vst [vmem:[#allocation2 + $0xb8] sm:$0xff] %v1451_v43  ;;  %v929_v56 = vadd.f32 %v928_v17, %v2798_v63  ;;  %v1462_v53 = vpop.f32.mrf.mxu1 }
 0x246   :  { %v1309_v28 = vpop.f32.mrf.mxu0 }
 0x247   :  { %v1135_v15 = vadd.f32 %v1134_v40, %v929_v56 }
 0x249   :  { %v1306_v30 = vadd.f32 %v1305_v60, %v1135_v15 }
 0x24b   :  { %v1455_v48 = vadd.f32 %v1454_v41, %v1306_v30  ;;  %v1146_v8 = vpop.f32.mrf.mxu3 }
 0x24c   :  { %v933_v33 = vpop.f32.mrf.mxu2 }
 0x24d   :  { %1509 = vst [vmem:[#allocation2 + $0xc0] sm:$0xff] %v1455_v48  ;;  %v934_v50 = vadd.f32 %v933_v33, %v2799_v19  ;;  %v1466_v45 = vpop.f32.mrf.mxu1 }
 0x24e   :  { %v1313_v51 = vpop.f32.mrf.mxu0 }
 0x24f   :  { %v1141_v20 = vadd.f32 %v1140_v2, %v934_v50 }
 0x251   :  { %v1310_v7 = vadd.f32 %v1309_v28, %v1141_v20 }
 0x253   :  { %v1459_v12 = vadd.f32 %v1458_v26, %v1310_v7  ;;  %v1152_v55 = vpop.f32.mrf.mxu3 }
 0x254   :  { %v938_v9 = vpop.f32.mrf.mxu2 }
 0x255   :  { %1510 = vst [vmem:[#allocation2 + $0xc8] sm:$0xff] %v1459_v12  ;;  %v939_v32 = vadd.f32 %v938_v9, %v2800_v38  ;;  %v1470_v36 = vpop.f32.mrf.mxu1 }
 0x256   :  { %v1317_v6 = vpop.f32.mrf.mxu0 }
 0x257   :  { %v1147_v21 = vadd.f32 %v1146_v8, %v939_v32 }
 0x259   :  { %v1314_v27 = vadd.f32 %v1313_v51, %v1147_v21 }
 0x25b   :  { %v1463_v31 = vadd.f32 %v1462_v53, %v1314_v27  ;;  %v1158_v11 = vpop.f32.mrf.mxu3 }
 0x25c   :  { %v943_v42 = vpop.f32.mrf.mxu2 }
 0x25d   :  { %1511 = vst [vmem:[#allocation2 + $0xd0] sm:$0xff] %v1463_v31  ;;  %v944_v34 = vadd.f32 %v943_v42, %v2801_v10  ;;  %v1474_v54 = vpop.f32.mrf.mxu1 }
 0x25e   :  { %v1321_v52 = vpop.f32.mrf.mxu0 }
 0x25f   :  { %v1153_v59 = vadd.f32 %v1152_v55, %v944_v34 }
 0x261   :  { %v1318_v5 = vadd.f32 %v1317_v6, %v1153_v59 }
 0x263   :  { %v1467_v16 = vadd.f32 %v1466_v45, %v1318_v5  ;;  %v1164_v49 = vpop.f32.mrf.mxu3 }
 0x264   :  { %v948_v44 = vpop.f32.mrf.mxu2 }
 0x265   :  { %1512 = vst [vmem:[#allocation2 + $0xd8] sm:$0xff] %v1467_v16  ;;  %v949_v24 = vadd.f32 %v948_v44, %v2802_v18  ;;  %v1478_v37 = vpop.f32.mrf.mxu1 }
 0x266   :  { %v1325_v47 = vpop.f32.mrf.mxu0 }
 0x267   :  { %v1159_v13 = vadd.f32 %v1158_v11, %v949_v24 }
 0x269   :  { %v1322_v39 = vadd.f32 %v1321_v52, %v1159_v13 }
 0x26b   :  { %v1471_v22 = vadd.f32 %v1470_v36, %v1322_v39  ;;  %v1170_v0 = vpop.f32.mrf.mxu3 }
 0x26c   :  { %v953_v58 = vpop.f32.mrf.mxu2 }
 0x26d   :  { %1513 = vst [vmem:[#allocation2 + $0xe0] sm:$0xff] %v1471_v22  ;;  %v954_v3 = vadd.f32 %v953_v58, %v2803_v62  ;;  %v1482_v56 = vpop.f32.mrf.mxu1 }
 0x26e   :  { %v1329_v4 = vpop.f32.mrf.mxu0 }
 0x26f   :  { %v1165_v29 = vadd.f32 %v1164_v49, %v954_v3 }
 0x271   :  { %v1326_v57 = vadd.f32 %v1325_v47, %v1165_v29 }
 0x273   :  { %v1475_v25 = vadd.f32 %v1474_v54, %v1326_v57  ;;  %v1176_v2 = vpop.f32.mrf.mxu3 }
 0x274   :  { %v958_v46 = vpop.f32.mrf.mxu2 }
 0x275   :  { %1514 = vst [vmem:[#allocation2 + $0xe8] sm:$0xff] %v1475_v25  ;;  %v959_v40 = vadd.f32 %v958_v46, %v2804_v35 }
 0x276   :  { %v1333_v17 = vpop.f32.mrf.mxu0 }
 0x277   :  { %v1171_v41 = vadd.f32 %v1170_v0, %v959_v40 }
 0x279   :  { %v1330_v1 = vadd.f32 %v1329_v4, %v1171_v41 }
 0x27b   :  { %v1479_v23 = vadd.f32 %v1478_v37, %v1330_v1 }
 0x27c   :  { %v963_v60 = vpop.f32.mrf.mxu2 }
 0x27d   :  { %1515 = vst [vmem:[#allocation2 + $0xf0] sm:$0xff] %v1479_v23  ;;  %v964_v14 = vadd.f32 %v963_v60, %v2805_v61 }
 0x27f   :  { %v1177_v43 = vadd.f32 %v1176_v2, %v964_v14 }
 0x281   :  { %v1334_v63 = vadd.f32 %v1333_v17, %v1177_v43 }
 0x283   :  { %v1483_v28 = vadd.f32 %v1482_v56, %v1334_v63 }
 0x285   :  { %1516 = vst [vmem:[#allocation2 + $0xf8] sm:$0xff] %v1483_v28 }
 0x286   :  { %1529 = dma.vmem_to_hbm [thread:$0]  %s1522_s1, 4096, %s1524_s27, [#allocation3], %s1708_s28, %s1708_s28, %s1709_s29  }
 0x287   :  { %1703 = dma.done.wait [#allocation3], 4096  }
 0x288   :  { %1704 = vsyncadd [#allocation3], 4294963200 }
 0x289   :  { %1534 = vsyncpa [#allocation3], 1 }

</bundles_post_ra>
